<compile_context>
chip_gen: v7x
topology: tpu7x:2x2x1
jax: 0.10.0
libtpu: 0.0.40
codegen_flags: <defaults>
</compile_context>

<pallas_src>
import jax
import jax.numpy as jnp
from jax.experimental import pallas as pl
from jax.experimental.pallas import tpu as pltpu

_HI = jax.lax.Precision.HIGHEST


# ------------------------------ small helpers ------------------------------ #

def _rup(x, m):
    return ((x + m - 1) // m) * m


def _pad2(a, rows, cols):
    return jnp.pad(a, ((0, rows - a.shape[0]), (0, cols - a.shape[1])))


def _pad_gates(w, rows, Hp, H):
    """(r0, 3H) GRU weight/bias (gate order r,z,n) -> (rows, 3*Hp), each gate
    zero-padded to Hp so every gate starts on a 128-lane boundary."""
    return jnp.concatenate(
        [_pad2(w[:, g * H:(g + 1) * H], rows, Hp) for g in range(3)], axis=1)


# ------------------------- parameter pre-processing ------------------------- #

def prepare_params(p, *, stream_dtype=jnp.float32):
    """Pack the 24 small tensors into 7 kernel inputs, padded to 128 lanes.
    Run ONCE per model (hoisted out of the decode loop)."""
    ninp, H3 = p["w_ih1"].shape
    H = H3 // 3
    C = p["w_ih2"].shape[0]
    natt = p["wh"].shape[1]
    dout = p["we"].shape[1]
    ninp_p, Hp, Cp, natt_p, dout_p = (_rup(d, 128)
                                      for d in (ninp, H, C, natt, dout))

    w1 = jnp.concatenate([_pad_gates(p["w_ih1"], ninp_p, Hp, H),
                          _pad_gates(p["w_hh1"], Hp, Hp, H)], axis=0)
    w2 = jnp.concatenate([_pad_gates(p["w_ih2"], Cp, Hp, H),
                          _pad_gates(p["w_hh2"], Hp, Hp, H)], axis=0)
    b_gru = jnp.concatenate([_pad_gates(p["b_ih1"], 1, Hp, H),
                             _pad_gates(p["b_hh1"], 1, Hp, H),
                             _pad_gates(p["b_ih2"], 1, Hp, H),
                             _pad_gates(p["b_hh2"], 1, Hp, H)], axis=0)
    wh = _pad2(p["wh"], Hp, natt_p)
    wa = _pad2(p["wa"], 1, natt_p)            # ba dropped (cancels in softmax)
    w_out = jnp.concatenate([_pad2(p["we"], ninp_p, dout_p),
                             _pad2(p["who"], Hp, dout_p),
                             _pad2(p["wc"], Cp, dout_p)], axis=0)
    b_out = _pad2(p["be"] + p["bho"] + p["bc"], 1, dout_p)

    pk = dict(
        w1=w1.astype(stream_dtype), w2=w2.astype(stream_dtype),
        b_gru=b_gru.astype(jnp.float32),
        wh=wh.astype(stream_dtype), wa=wa.astype(jnp.float32),
        w_out=w_out.astype(stream_dtype), b_out=b_out.astype(jnp.float32))
    dims = dict(ninp=ninp, H=H, C=C, natt=natt, dout=dout,
                ninp_p=ninp_p, Hp=Hp, Cp=Cp, natt_p=natt_p, dout_p=dout_p)
    return pk, dims


def prepare_encoder(enc, mask, p, dims, *, stream_dtype=jnp.float32):
    """Step-invariant encoder-side attention projection (enc@ws + bs + bh),
    plus padding of enc/mask.  Run ONCE per source sentence."""
    B, S, C = enc.shape
    S_p = _rup(S, 8)
    Cp, natt_p = dims["Cp"], dims["natt_p"]
    enc_p = jnp.pad(enc, ((0, 0), (0, S_p - S), (0, Cp - C))).astype(jnp.float32)
    ws = _pad2(p["ws"], Cp, natt_p)
    bsbh = _pad2(p["bs"] + p["bh"], 1, natt_p)
    attnh = jnp.einsum("bsc,cn->bsn", enc_p, ws, precision=_HI) + bsbh
    mask_p = jnp.pad(mask, ((0, 0), (0, S_p - S))).astype(jnp.float32)
    return enc_p.astype(stream_dtype), attnh.astype(stream_dtype), mask_p


# ------------------------------ kernel math --------------------------------- #

def _gru_cell(x, h, w_ref, b_ih, b_hh, Hp, in_dim):
    """PyTorch nn.GRUCell semantics on 128-aligned padded gates.
    w_ref: (in_dim + Hp, 3*Hp); b_*: (1, 3*Hp)."""
    wd = w_ref.dtype
    gi = jnp.dot(x.astype(wd), w_ref[0:in_dim, :],
                 preferred_element_type=jnp.float32) + b_ih
    gh = jnp.dot(h.astype(wd), w_ref[in_dim:, :],
                 preferred_element_type=jnp.float32) + b_hh
    gs = gi + gh
    r = jax.nn.sigmoid(gs[:, 0:Hp])
    z = jax.nn.sigmoid(gs[:, Hp:2 * Hp])
    n = jnp.tanh(gi[:, 2 * Hp:] + r * gh[:, 2 * Hp:])
    return (1.0 - z) * n + z * h


def _decoder_step(x, h, mask, enc, attnh,
                  w1_ref, w2_ref, bgru_ref, wh_ref, wa_ref, wout_ref, bout_ref):
    ninp_p = x.shape[1]
    Hp = h.shape[1]
    Cp = enc.shape[2]

    b_ih1, b_hh1 = bgru_ref[0:1, :], bgru_ref[1:2, :]
    b_ih2, b_hh2 = bgru_ref[2:3, :], bgru_ref[3:4, :]

    # gru1: hidden-state proposal
    hp = _gru_cell(x, h, w1_ref, b_ih1, b_hh1, Hp, ninp_p)          # (bb, Hp)

    # Bahdanau attention; encoder-side projection is precomputed outside.
    h_proj = jnp.dot(hp.astype(wh_ref.dtype), wh_ref[...],
                     preferred_element_type=jnp.float32)            # (bb, natt_p)
    t = jnp.tanh(attnh.astype(jnp.float32) + h_proj[:, None, :])    # (bb, S, natt_p)
    logit = jnp.sum(t * wa_ref[...][:, None, :], axis=-1)           # (bb, S)
    # ba dropped: a uniform constant on the unmasked logits cancels in softmax.
    logit = jnp.where(mask > 0.0, logit, jnp.float32(-1e30))
    m = jnp.max(logit, axis=-1, keepdims=True)
    e = jnp.exp(logit - m)
    s = jnp.sum(e, axis=-1, keepdims=True)
    r = pl.reciprocal(s, approx=True)
    r = r * (2.0 - s * r)          # one Newton step -> near-exact normalization
    probs = e * r                                                    # (bb, S)

    # Context vector on the MXU (batched matvec), not VALU+XLU.
    ctx = jnp.einsum("bqs,bsc->bqc",
                     probs[:, None, :].astype(enc.dtype), enc,
                     preferred_element_type=jnp.float32)[:, 0, :]    # (bb, Cp)

    # gru2: final hidden state
    h_new = _gru_cell(ctx, hp, w2_ref, b_ih2, b_hh2, Hp, Cp)         # (bb, Hp)

    # readout: single fused matmul on concat([x, h_new, ctx])
    cat = jnp.concatenate([x, h_new, ctx], axis=1)
    dec_out = jnp.tanh(
        jnp.dot(cat.astype(wout_ref.dtype), wout_ref[...],
                preferred_element_type=jnp.float32) + bout_ref[...])
    # readout_dp (Dropout) is identity in eval mode.
    return dec_out, h_new


def decoder_kernel(xs_ref, h0_ref, mask_ref, enc_ref, attnh_ref,
                   w1_ref, w2_ref, bgru_ref, wh_ref, wa_ref, wout_ref, bout_ref,
                   out_ref, hfin_ref,
                   h_carry):
    t_idx = pl.program_id(1)

    @pl.when(t_idx == 0)
    def _():
        h_carry[...] = h0_ref[...]

    dec_out, h_new = _decoder_step(
        xs_ref[0], h_carry[...], mask_ref[...], enc_ref[...], attnh_ref[...],
        w1_ref, w2_ref, bgru_ref, wh_ref, wa_ref, wout_ref, bout_ref)

    out_ref[0] = dec_out
    h_carry[...] = h_new
    hfin_ref[...] = h_new


# ------------------------------ pallas wrapper ------------------------------ #

def _fused_pallas_call(xs_p, h0_p, mask_p, enc_p, attnh_p, pk, dims, batch_block):
    T, B, ninp_p = xs_p.shape
    Hp, dout_p = dims["Hp"], dims["dout_p"]
    S_p, Cp = enc_p.shape[1], enc_p.shape[2]
    natt_p = attnh_p.shape[2]

    bb = B if batch_block is None else batch_block
    assert B % bb == 0, "batch must be divisible by batch_block"
    grid = (B // bb, T)            # batch parallel (megacore), time arbitrary

    def tmap(b, t): return (t, b, 0)
    def bmap2(b, t): return (b, 0)
    def bmap3(b, t): return (b, 0, 0)
    def wmap(b, t): return (0, 0)

    in_specs = [
        pl.BlockSpec((1, bb, ninp_p), tmap),
        pl.BlockSpec((bb, Hp), bmap2),
        pl.BlockSpec((bb, S_p), bmap2),
        pl.BlockSpec((bb, S_p, Cp), bmap3),
        pl.BlockSpec((bb, S_p, natt_p), bmap3),
        # weights: constant index maps -> VMEM-resident across all grid steps
        pl.BlockSpec(pk["w1"].shape, wmap),
        pl.BlockSpec(pk["w2"].shape, wmap),
        pl.BlockSpec(pk["b_gru"].shape, wmap),
        pl.BlockSpec(pk["wh"].shape, wmap),
        pl.BlockSpec(pk["wa"].shape, wmap),
        pl.BlockSpec(pk["w_out"].shape, wmap),
        pl.BlockSpec(pk["b_out"].shape, wmap),
    ]
    out_specs = (
        pl.BlockSpec((1, bb, dout_p), tmap),
        pl.BlockSpec((bb, Hp), bmap2),
    )

    return pl.pallas_call(
        decoder_kernel,
        out_shape=(jax.ShapeDtypeStruct((T, B, dout_p), jnp.float32),
                   jax.ShapeDtypeStruct((B, Hp), jnp.float32)),
        grid_spec=pltpu.PrefetchScalarGridSpec(
            num_scalar_prefetch=0,
            grid=grid,
            in_specs=in_specs,
            out_specs=out_specs,
            scratch_shapes=[pltpu.VMEM((bb, Hp), jnp.float32)],  # carried hidden
        ),
        compiler_params=pltpu.CompilerParams(
            dimension_semantics=("parallel", "arbitrary")),
        input_output_aliases={1: 1},     # h0 buffer reused for final hidden (P8)
    )(xs_p, h0_p, mask_p, enc_p, attnh_p,
      pk["w1"], pk["w2"], pk["b_gru"], pk["wh"], pk["wa"],
      pk["w_out"], pk["b_out"])


def decoder_decode(xs, h0, mask, enc, params, *, stream_dtype=jnp.float32,
                   batch_block=None, pk_dims=None):
    """Fused T-step autoregressive decode (teacher-forced embeddings xs)."""
    if pk_dims is None:
        pk, dims = prepare_params(params, stream_dtype=stream_dtype)
    else:
        pk, dims = pk_dims
    stream_dtype = pk["w1"].dtype

    enc_p, attnh_p, mask_p = prepare_encoder(enc, mask, params, dims,
                                             stream_dtype=stream_dtype)
    T, B, ninp = xs.shape
    xs_p = jnp.pad(xs, ((0, 0), (0, 0), (0, dims["ninp_p"] - ninp))
                   ).astype(jnp.float32)
    h0_p = jnp.pad(h0, ((0, 0), (0, dims["Hp"] - dims["H"]))).astype(jnp.float32)

    outs_p, hfin_p = _fused_pallas_call(xs_p, h0_p, mask_p, enc_p, attnh_p,
                                        pk, dims, batch_block)
    return outs_p[:, :, :dims["dout"]], hfin_p[:, :dims["H"]]


def decoder_forward(inputs, params, *, stream_dtype=jnp.float32,
                    batch_block=None, pk_dims=None):
    """Matches Decoder.forward(prev_trg_emb, dec_hidden, enc_mask, enc_hiddens)."""
    x, h, mask, enc = inputs
    outs, h_new = decoder_decode(x[None], h, mask, enc, params,
                                 stream_dtype=stream_dtype,
                                 batch_block=batch_block, pk_dims=pk_dims)
    return outs[0], h_new


# --------------------------- pure-JAX reference ----------------------------- #

def _ref_gru(x, h, w_ih, w_hh, b_ih, b_hh):
    H = h.shape[1]
    gi = jnp.dot(x, w_ih, precision=_HI) + b_ih
    gh = jnp.dot(h, w_hh, precision=_HI) + b_hh
    r = jax.nn.sigmoid(gi[:, :H] + gh[:, :H])
    z = jax.nn.sigmoid(gi[:, H:2 * H] + gh[:, H:2 * H])
    n = jnp.tanh(gi[:, 2 * H:] + r * gh[:, 2 * H:])
    return (1.0 - z) * n + z * h


def decoder_reference(inputs, p):
    x, h, mask, enc = inputs
    hp = _ref_gru(x, h, p["w_ih1"], p["w_hh1"], p["b_ih1"], p["b_hh1"])
    attn_h = jnp.einsum("bsc,cn->bsn", enc, p["ws"], precision=_HI) + p["bs"]
    attn_h = attn_h + (jnp.dot(hp, p["wh"], precision=_HI) + p["bh"])[:, None, :]
    logit = jnp.sum(jnp.tanh(attn_h) * p["wa"][:, None, :], axis=-1) + p["ba"][0, 0]
    logit = jnp.where(mask > 0.0, logit, -1e30)
    probs = jax.nn.softmax(logit, axis=-1)
    ctx = jnp.einsum("bs,bsc->bc", probs, enc, precision=_HI)
    h_new = _ref_gru(ctx, hp, p["w_ih2"], p["w_hh2"], p["b_ih2"], p["b_hh2"])
    out = jnp.tanh(jnp.dot(x, p["we"], precision=_HI) + p["be"]
                   + jnp.dot(h_new, p["who"], precision=_HI) + p["bho"]
                   + jnp.dot(ctx, p["wc"], precision=_HI) + p["bc"])
    return out, h_new


# --------------------------------- main ------------------------------------ #

if __name__ == "__main__":
    B, S, T = 16, 16, 3
    ninp, dec_nhid, enc_nctx, natt, dec_nout = 32, 32, 32, 32, 32

    key = jax.random.PRNGKey(0)
    ks = jax.random.split(key, 48)
    ki = iter(ks)

    def rnd(shape, scale=0.1):
        return scale * jax.random.normal(next(ki), shape, dtype=jnp.float32)

    # runtime inputs
    x = rnd((B, ninp), 1.0)
    h = rnd((B, dec_nhid), 1.0)
    enc = rnd((B, S, enc_nctx), 1.0)
    xs = rnd((T, B, ninp), 1.0)
    # mask: varying valid lengths per batch row (>= 4 valid positions; an
    # all-zero mask would fall back to uniform attention — same as reference).
    lens = (jnp.arange(B) % (S - 4)) + 4
    mask = (jnp.arange(S)[None, :] < lens[:, None]).astype(jnp.float32)

    params = {
        # gru1 (ninp -> dec_nhid), weights pre-transposed to (in, 3H), gates r,z,n
        "w_ih1": rnd((ninp, 3 * dec_nhid)), "w_hh1": rnd((dec_nhid, 3 * dec_nhid)),
        "b_ih1": rnd((1, 3 * dec_nhid)),    "b_hh1": rnd((1, 3 * dec_nhid)),
        # gru2 (enc_nctx -> dec_nhid)
        "w_ih2": rnd((enc_nctx, 3 * dec_nhid)), "w_hh2": rnd((dec_nhid, 3 * dec_nhid)),
        "b_ih2": rnd((1, 3 * dec_nhid)),        "b_hh2": rnd((1, 3 * dec_nhid)),
        # attention: s2s, h2s, a2o
        "ws": rnd((enc_nctx, natt)), "bs": rnd((1, natt)),
        "wh": rnd((dec_nhid, natt)), "bh": rnd((1, natt)),
        "wa": rnd((1, natt)),        "ba": rnd((1, 1)),
        # readout: e2o, h2o, c2o
        "we": rnd((ninp, dec_nout)),      "be": rnd((1, dec_nout)),
        "who": rnd((dec_nhid, dec_nout)), "bho": rnd((1, dec_nout)),
        "wc": rnd((enc_nctx, dec_nout)),  "bc": rnd((1, dec_nout)),
    }

    inputs = (x, h, mask, enc)

    # References (computed up-front, before any buffer donation).
    ref_out, ref_h = decoder_reference(inputs, params)
    refs, h_ref_t = [], h
    for t in range(T):
        o_t, h_ref_t = decoder_reference((xs[t], h_ref_t, mask, enc), params)
        refs.append(o_t)
    refs = jnp.stack(refs)

    # One-time packing/padding (hoisted out of the decode loop).
    pk32, dims = prepare_params(params, stream_dtype=jnp.float32)

    # ---- single step (module semantics), f32 streaming --------------------
    out1, h1 = jax.block_until_ready(
        decoder_forward(inputs, params, pk_dims=(pk32, dims), batch_block=8))
    assert out1.shape == (B, dec_nout) and h1.shape == (B, dec_nhid)
    assert jnp.allclose(out1, ref_out, atol=2e-3, rtol=2e-3)
    assert jnp.allclose(h1, ref_h, atol=2e-3, rtol=2e-3)

    # ---- fused T-step decode (one pallas_call, h carried in VMEM) ---------
    outs, hT = jax.block_until_ready(
        decoder_decode(xs, h, mask, enc, params, pk_dims=(pk32, dims),
                       batch_block=8))
    assert outs.shape == (T, B, dec_nout) and hT.shape == (B, dec_nhid)
    assert jnp.allclose(outs, refs, atol=5e-3, rtol=5e-3)
    assert jnp.allclose(hT, h_ref_t, atol=5e-3, rtol=5e-3)

    # ---- bf16-streamed variant (halves HBM traffic of enc/attnh/weights) --
    pk16, dims16 = prepare_params(params, stream_dtype=jnp.bfloat16)
    out_bf, h_bf = jax.block_until_ready(
        decoder_forward(inputs, params, pk_dims=(pk16, dims16), batch_block=8))
    assert jnp.allclose(out_bf, ref_out, atol=5e-2, rtol=5e-2)
    assert jnp.allclose(h_bf, ref_h, atol=5e-2, rtol=5e-2)

    print("KERNEL_OK")
</pallas_src>

<mosaic_0001>
module attributes {stable_mosaic.version = 11 : i64} {
  func.func @decoder_kernel(%arg0: i32, %arg1: i32, %arg2: memref<1x8x128xf32, #tpu.memory_space<vmem>>, %arg3: memref<8x128xf32, #tpu.memory_space<vmem>>, %arg4: memref<8x16xf32, #tpu.memory_space<vmem>>, %arg5: memref<8x16x128xf32, #tpu.memory_space<vmem>>, %arg6: memref<8x16x128xf32, #tpu.memory_space<vmem>>, %arg7: memref<256x384xf32, #tpu.memory_space<vmem>>, %arg8: memref<256x384xf32, #tpu.memory_space<vmem>>, %arg9: memref<4x384xf32, #tpu.memory_space<vmem>>, %arg10: memref<128x128xf32, #tpu.memory_space<vmem>>, %arg11: memref<1x128xf32, #tpu.memory_space<vmem>>, %arg12: memref<384x128xf32, #tpu.memory_space<vmem>>, %arg13: memref<1x128xf32, #tpu.memory_space<vmem>>, %arg14: memref<1x8x128xf32, #tpu.memory_space<vmem>>, %arg15: memref<8x128xf32, #tpu.memory_space<vmem>>, %arg16: memref<8x128xf32, #tpu.memory_space<vmem>>) attributes {dimension_semantics = [#tpu.dimension_semantics<parallel>, #tpu.dimension_semantics<arbitrary>], iteration_bounds = array<i64: 2, 1>, scalar_prefetch = 0 : i64, scratch_operands = 1 : i64, tpu.core_type = #tpu.core_type<tc>, window_params = [{transform_indices = @transform_0, window_bounds = array<i64: 1, 8, 128>}, {transform_indices = @transform_1, window_bounds = array<i64: 8, 128>}, {transform_indices = @transform_2, window_bounds = array<i64: 8, 16>}, {transform_indices = @transform_3, window_bounds = array<i64: 8, 16, 128>}, {transform_indices = @transform_4, window_bounds = array<i64: 8, 16, 128>}, {pipeline_mode = #tpu.pipeline_mode<synchronous>, transform_indices = @transform_5, window_bounds = array<i64: 256, 384>}, {pipeline_mode = #tpu.pipeline_mode<synchronous>, transform_indices = @transform_6, window_bounds = array<i64: 256, 384>}, {pipeline_mode = #tpu.pipeline_mode<synchronous>, transform_indices = @transform_7, window_bounds = array<i64: 4, 384>}, {pipeline_mode = #tpu.pipeline_mode<synchronous>, transform_indices = @transform_8, window_bounds = array<i64: 128, 128>}, {pipeline_mode = #tpu.pipeline_mode<synchronous>, transform_indices = @transform_9, window_bounds = array<i64: 1, 128>}, {pipeline_mode = #tpu.pipeline_mode<synchronous>, transform_indices = @transform_10, window_bounds = array<i64: 384, 128>}, {pipeline_mode = #tpu.pipeline_mode<synchronous>, transform_indices = @transform_11, window_bounds = array<i64: 1, 128>}, {transform_indices = @transform_12, window_bounds = array<i64: 1, 8, 128>}, {transform_indices = @transform_13, window_bounds = array<i64: 8, 128>}]} {
    %c0_i32 = arith.constant 0 : i32
    %0 = arith.cmpi eq, %arg1, %c0_i32 : i32
    %1 = arith.extui %0 : i1 to i32
    %c0_i32_0 = arith.constant 0 : i32
    %2 = arith.cmpi ne, %1, %c0_i32_0 : i32
    scf.if %2 {
      %c0_58 = arith.constant 0 : index
      %c0_59 = arith.constant 0 : index
      %119 = vector.load %arg3[%c0_58, %c0_59] : memref<8x128xf32, #tpu.memory_space<vmem>>, vector<8x128xf32>
      %c0_60 = arith.constant 0 : index
      %c0_61 = arith.constant 0 : index
      %120 = vector.load %arg16[%c0_60, %c0_61] : memref<8x128xf32, #tpu.memory_space<vmem>>, vector<8x128xf32>
      tpu.vector_store %arg16[%c0_60, %c0_61], %119 {strides = array<i32>} : memref<8x128xf32, #tpu.memory_space<vmem>>, vector<8x128xf32>,
    } else {
    }
    %c0 = arith.constant 0 : index
    %c0_1 = arith.constant 0 : index
    %c0_2 = arith.constant 0 : index
    %3 = vector.load %arg2[%c0, %c0_1, %c0_2] : memref<1x8x128xf32, #tpu.memory_space<vmem>>, vector<1x8x128xf32>
    %4 = vector.shape_cast %3 : vector<1x8x128xf32> to vector<8x128xf32>
    %c0_3 = arith.constant 0 : index
    %c0_4 = arith.constant 0 : index
    %5 = vector.load %arg16[%c0_3, %c0_4] : memref<8x128xf32, #tpu.memory_space<vmem>>, vector<8x128xf32>
    %c0_5 = arith.constant 0 : index
    %c0_6 = arith.constant 0 : index
    %6 = vector.load %arg4[%c0_5, %c0_6] : memref<8x16xf32, #tpu.memory_space<vmem>>, vector<8x16xf32>
    %c0_7 = arith.constant 0 : index
    %c0_8 = arith.constant 0 : index
    %c0_9 = arith.constant 0 : index
    %7 = vector.load %arg5[%c0_7, %c0_8, %c0_9] : memref<8x16x128xf32, #tpu.memory_space<vmem>>, vector<8x16x128xf32>
    %c0_10 = arith.constant 0 : index
    %c0_11 = arith.constant 0 : index
    %c0_12 = arith.constant 0 : index
    %8 = vector.load %arg6[%c0_10, %c0_11, %c0_12] : memref<8x16x128xf32, #tpu.memory_space<vmem>>, vector<8x16x128xf32>
    %c0_13 = arith.constant 0 : index
    %c0_14 = arith.constant 0 : index
    %9 = vector.load %arg9[%c0_13, %c0_14] : memref<4x384xf32, #tpu.memory_space<vmem>>, vector<1x384xf32>
    %c1 = arith.constant 1 : index
    %c0_15 = arith.constant 0 : index
    %10 = vector.load %arg9[%c1, %c0_15] : memref<4x384xf32, #tpu.memory_space<vmem>>, vector<1x384xf32>
    %c2 = arith.constant 2 : index
    %c0_16 = arith.constant 0 : index
    %11 = vector.load %arg9[%c2, %c0_16] : memref<4x384xf32, #tpu.memory_space<vmem>>, vector<1x384xf32>
    %c3 = arith.constant 3 : index
    %c0_17 = arith.constant 0 : index
    %12 = vector.load %arg9[%c3, %c0_17] : memref<4x384xf32, #tpu.memory_space<vmem>>, vector<1x384xf32>
    %c0_18 = arith.constant 0 : index
    %c0_19 = arith.constant 0 : index
    %13 = vector.load %arg7[%c0_18, %c0_19] : memref<256x384xf32, #tpu.memory_space<vmem>>, vector<128x384xf32>
    %cst = arith.constant dense<0.000000e+00> : vector<8x384xf32>
    %14 = tpu.matmul %4, %13, %cst {dimension_numbers = #tpu.dot_dimension_numbers<[1], [0], [0], [1], [0, 0, 1, 1], [], []>} : vector<8x128xf32>, vector<128x384xf32>, vector<8x384xf32> -> vector<8x384xf32>
    %15 = vector.broadcast %9 : vector<1x384xf32> to vector<8x384xf32>
    %16 = arith.addf %14, %15 : vector<8x384xf32>
    %c128 = arith.constant 128 : index
    %c0_20 = arith.constant 0 : index
    %17 = vector.load %arg7[%c128, %c0_20] : memref<256x384xf32, #tpu.memory_space<vmem>>, vector<128x384xf32>
    %cst_21 = arith.constant dense<0.000000e+00> : vector<8x384xf32>
    %18 = tpu.matmul %5, %17, %cst_21 {dimension_numbers = #tpu.dot_dimension_numbers<[1], [0], [0], [1], [0, 0, 1, 1], [], []>} : vector<8x128xf32>, vector<128x384xf32>, vector<8x384xf32> -> vector<8x384xf32>
    %19 = vector.broadcast %10 : vector<1x384xf32> to vector<8x384xf32>
    %20 = arith.addf %18, %19 : vector<8x384xf32>
    %21 = arith.addf %16, %20 : vector<8x384xf32>
    %22 = vector.extract_strided_slice %21 {offsets = [0, 0], sizes = [8, 128], strides = [1, 1]} : vector<8x384xf32> to vector<8x128xf32>
    %23 = arith.negf %22 : vector<8x128xf32>
    %24 = math.exp %23 : vector<8x128xf32>
    %cst_22 = arith.constant 1.000000e+00 : f32
    %25 = vector.broadcast %cst_22 : f32 to vector<8x128xf32>
    %26 = arith.addf %25, %24 : vector<8x128xf32>
    %27 = arith.divf %25, %26 : vector<8x128xf32>
    %28 = vector.extract_strided_slice %21 {offsets = [0, 128], sizes = [8, 128], strides = [1, 1]} : vector<8x384xf32> to vector<8x128xf32>
    %29 = arith.negf %28 : vector<8x128xf32>
    %30 = math.exp %29 : vector<8x128xf32>
    %cst_23 = arith.constant 1.000000e+00 : f32
    %31 = vector.broadcast %cst_23 : f32 to vector<8x128xf32>
    %32 = arith.addf %31, %30 : vector<8x128xf32>
    %33 = arith.divf %31, %32 : vector<8x128xf32>
    %34 = vector.extract_strided_slice %16 {offsets = [0, 256], sizes = [8, 128], strides = [1, 1]} : vector<8x384xf32> to vector<8x128xf32>
    %35 = vector.extract_strided_slice %20 {offsets = [0, 256], sizes = [8, 128], strides = [1, 1]} : vector<8x384xf32> to vector<8x128xf32>
    %36 = arith.mulf %27, %35 : vector<8x128xf32>
    %37 = arith.addf %34, %36 : vector<8x128xf32>
    %38 = math.tanh %37 : vector<8x128xf32>
    %cst_24 = arith.constant 1.000000e+00 : f32
    %39 = vector.broadcast %cst_24 : f32 to vector<8x128xf32>
    %40 = arith.subf %39, %33 : vector<8x128xf32>
    %41 = arith.mulf %40, %38 : vector<8x128xf32>
    %42 = arith.mulf %33, %5 : vector<8x128xf32>
    %43 = arith.addf %41, %42 : vector<8x128xf32>
    %c0_25 = arith.constant 0 : index
    %c0_26 = arith.constant 0 : index
    %44 = vector.load %arg10[%c0_25, %c0_26] : memref<128x128xf32, #tpu.memory_space<vmem>>, vector<128x128xf32>
    %cst_27 = arith.constant dense<0.000000e+00> : vector<8x128xf32>
    %45 = tpu.matmul %43, %44, %cst_27 {dimension_numbers = #tpu.dot_dimension_numbers<[1], [0], [0], [1], [0, 0, 1, 1], [], []>} : vector<8x128xf32>, vector<128x128xf32>, vector<8x128xf32> -> vector<8x128xf32>
    %46 = vector.shape_cast %45 : vector<8x128xf32> to vector<8x1x128xf32>
    %47 = vector.broadcast %46 : vector<8x1x128xf32> to vector<8x16x128xf32>
    %48 = arith.addf %8, %47 : vector<8x16x128xf32>
    %49 = math.tanh %48 : vector<8x16x128xf32>
    %c0_28 = arith.constant 0 : index
    %c0_29 = arith.constant 0 : index
    %50 = vector.load %arg11[%c0_28, %c0_29] : memref<1x128xf32, #tpu.memory_space<vmem>>, vector<1x128xf32>
    %51 = vector.shape_cast %50 : vector<1x128xf32> to vector<1x1x128xf32>
    %52 = vector.broadcast %51 : vector<1x1x128xf32> to vector<8x16x128xf32>
    %53 = arith.mulf %49, %52 : vector<8x16x128xf32>
    %cst_30 = arith.constant dense<0.000000e+00> : vector<8x16xf32>
    %54 = vector.multi_reduction <add>, %53, %cst_30 [2] : vector<8x16x128xf32> to vector<8x16xf32>
    %cst_31 = arith.constant 0.000000e+00 : f32
    %55 = vector.broadcast %cst_31 : f32 to vector<8x16xf32>
    %56 = arith.cmpf ogt, %6, %55 : vector<8x16xf32>
    %cst_32 = arith.constant -1.000000e+30 : f32
    %57 = vector.broadcast %cst_32 : f32 to vector<8x16xf32>
    %58 = arith.select %56, %54, %57 : vector<8x16xi1>, vector<8x16xf32>
    %cst_33 = arith.constant dense<0xFF800000> : vector<8xf32>
    %59 = vector.multi_reduction <maximumf>, %58, %cst_33 [1] : vector<8x16xf32> to vector<8xf32>
    %60 = vector.shape_cast %59 : vector<8xf32> to vector<8x1xf32>
    %61 = vector.broadcast %60 : vector<8x1xf32> to vector<8x16xf32>
    %62 = arith.subf %58, %61 : vector<8x16xf32>
    %63 = math.exp %62 : vector<8x16xf32>
    %cst_34 = arith.constant dense<0.000000e+00> : vector<8xf32>
    %64 = vector.multi_reduction <add>, %63, %cst_34 [1] : vector<8x16xf32> to vector<8xf32>
    %65 = vector.shape_cast %64 : vector<8xf32> to vector<8x1xf32>
    %66 = tpu.reciprocal %65 {approx = true} : vector<8x1xf32> -> vector<8x1xf32>
    %67 = arith.mulf %65, %66 : vector<8x1xf32>
    %cst_35 = arith.constant 2.000000e+00 : f32
    %68 = vector.broadcast %cst_35 : f32 to vector<8x1xf32>
    %69 = arith.subf %68, %67 : vector<8x1xf32>
    %70 = arith.mulf %66, %69 : vector<8x1xf32>
    %71 = vector.broadcast %70 : vector<8x1xf32> to vector<8x16xf32>
    %72 = arith.mulf %63, %71 : vector<8x16xf32>
    %73 = vector.shape_cast %72 : vector<8x16xf32> to vector<8x1x16xf32>
    "tpu.trace_start"() <{level = 10 : i32, message = "bqs,bsc->bqc"}> : () -> ()
    %cst_36 = arith.constant dense<0.000000e+00> : vector<8x1x128xf32>
    %74 = tpu.matmul %73, %7, %cst_36 {dimension_numbers = #tpu.dot_dimension_numbers<[2], [1], [1], [2], [0, 0, 0, 1, 1, 2], [0], [0]>} : vector<8x1x16xf32>, vector<8x16x128xf32>, vector<8x1x128xf32> -> vector<8x1x128xf32>
    "tpu.trace_stop"() : () -> ()
    %75 = vector.shape_cast %74 : vector<8x1x128xf32> to vector<8x128xf32>
    %c0_37 = arith.constant 0 : index
    %c0_38 = arith.constant 0 : index
    %76 = vector.load %arg8[%c0_37, %c0_38] : memref<256x384xf32, #tpu.memory_space<vmem>>, vector<128x384xf32>
    %cst_39 = arith.constant dense<0.000000e+00> : vector<8x384xf32>
    %77 = tpu.matmul %75, %76, %cst_39 {dimension_numbers = #tpu.dot_dimension_numbers<[1], [0], [0], [1], [0, 0, 1, 1], [], []>} : vector<8x128xf32>, vector<128x384xf32>, vector<8x384xf32> -> vector<8x384xf32>
    %78 = vector.broadcast %11 : vector<1x384xf32> to vector<8x384xf32>
    %79 = arith.addf %77, %78 : vector<8x384xf32>
    %c128_40 = arith.constant 128 : index
    %c0_41 = arith.constant 0 : index
    %80 = vector.load %arg8[%c128_40, %c0_41] : memref<256x384xf32, #tpu.memory_space<vmem>>, vector<128x384xf32>
    %cst_42 = arith.constant dense<0.000000e+00> : vector<8x384xf32>
    %81 = tpu.matmul %43, %80, %cst_42 {dimension_numbers = #tpu.dot_dimension_numbers<[1], [0], [0], [1], [0, 0, 1, 1], [], []>} : vector<8x128xf32>, vector<128x384xf32>, vector<8x384xf32> -> vector<8x384xf32>
    %82 = vector.broadcast %12 : vector<1x384xf32> to vector<8x384xf32>
    %83 = arith.addf %81, %82 : vector<8x384xf32>
    %84 = arith.addf %79, %83 : vector<8x384xf32>
    %85 = vector.extract_strided_slice %84 {offsets = [0, 0], sizes = [8, 128], strides = [1, 1]} : vector<8x384xf32> to vector<8x128xf32>
    %86 = arith.negf %85 : vector<8x128xf32>
    %87 = math.exp %86 : vector<8x128xf32>
    %cst_43 = arith.constant 1.000000e+00 : f32
    %88 = vector.broadcast %cst_43 : f32 to vector<8x128xf32>
    %89 = arith.addf %88, %87 : vector<8x128xf32>
    %90 = arith.divf %88, %89 : vector<8x128xf32>
    %91 = vector.extract_strided_slice %84 {offsets = [0, 128], sizes = [8, 128], strides = [1, 1]} : vector<8x384xf32> to vector<8x128xf32>
    %92 = arith.negf %91 : vector<8x128xf32>
    %93 = math.exp %92 : vector<8x128xf32>
    %cst_44 = arith.constant 1.000000e+00 : f32
    %94 = vector.broadcast %cst_44 : f32 to vector<8x128xf32>
    %95 = arith.addf %94, %93 : vector<8x128xf32>
    %96 = arith.divf %94, %95 : vector<8x128xf32>
    %97 = vector.extract_strided_slice %79 {offsets = [0, 256], sizes = [8, 128], strides = [1, 1]} : vector<8x384xf32> to vector<8x128xf32>
    %98 = vector.extract_strided_slice %83 {offsets = [0, 256], sizes = [8, 128], strides = [1, 1]} : vector<8x384xf32> to vector<8x128xf32>
    %99 = arith.mulf %90, %98 : vector<8x128xf32>
    %100 = arith.addf %97, %99 : vector<8x128xf32>
    %101 = math.tanh %100 : vector<8x128xf32>
    %cst_45 = arith.constant 1.000000e+00 : f32
    %102 = vector.broadcast %cst_45 : f32 to vector<8x128xf32>
    %103 = arith.subf %102, %96 : vector<8x128xf32>
    %104 = arith.mulf %103, %101 : vector<8x128xf32>
    %105 = arith.mulf %96, %43 : vector<8x128xf32>
    %106 = arith.addf %104, %105 : vector<8x128xf32>
    %107 = tpu.concatenate %4, %106, %75 in 1 : vector<8x128xf32>, vector<8x128xf32>, vector<8x128xf32> -> vector<8x384xf32>
    %c0_46 = arith.constant 0 : index
    %c0_47 = arith.constant 0 : index
    %108 = vector.load %arg12[%c0_46, %c0_47] : memref<384x128xf32, #tpu.memory_space<vmem>>, vector<384x128xf32>
    %cst_48 = arith.constant dense<0.000000e+00> : vector<8x128xf32>
    %109 = tpu.matmul %107, %108, %cst_48 {dimension_numbers = #tpu.dot_dimension_numbers<[1], [0], [0], [1], [0, 0, 1, 1], [], []>} : vector<8x384xf32>, vector<384x128xf32>, vector<8x128xf32> -> vector<8x128xf32>
    %c0_49 = arith.constant 0 : index
    %c0_50 = arith.constant 0 : index
    %110 = vector.load %arg13[%c0_49, %c0_50] : memref<1x128xf32, #tpu.memory_space<vmem>>, vector<1x128xf32>
    %111 = vector.broadcast %110 : vector<1x128xf32> to vector<8x128xf32>
    %112 = arith.addf %109, %111 : vector<8x128xf32>
    %113 = math.tanh %112 : vector<8x128xf32>
    %c0_51 = arith.constant 0 : index
    %c0_52 = arith.constant 0 : index
    %c0_53 = arith.constant 0 : index
    %114 = vector.load %arg14[%c0_51, %c0_52, %c0_53] : memref<1x8x128xf32, #tpu.memory_space<vmem>>, vector<1x8x128xf32>
    %115 = vector.shape_cast %114 : vector<1x8x128xf32> to vector<8x128xf32>
    %116 = vector.shape_cast %113 : vector<8x128xf32> to vector<1x8x128xf32>
    tpu.vector_store %arg14[%c0_51, %c0_52, %c0_53], %116 {strides = array<i32>} : memref<1x8x128xf32, #tpu.memory_space<vmem>>, vector<1x8x128xf32>,
    %c0_54 = arith.constant 0 : index
    %c0_55 = arith.constant 0 : index
    %117 = vector.load %arg16[%c0_54, %c0_55] : memref<8x128xf32, #tpu.memory_space<vmem>>, vector<8x128xf32>
    tpu.vector_store %arg16[%c0_54, %c0_55], %106 {strides = array<i32>} : memref<8x128xf32, #tpu.memory_space<vmem>>, vector<8x128xf32>,
    %c0_56 = arith.constant 0 : index
    %c0_57 = arith.constant 0 : index
    %118 = vector.load %arg15[%c0_56, %c0_57] : memref<8x128xf32, #tpu.memory_space<vmem>>, vector<8x128xf32>
    tpu.vector_store %arg15[%c0_56, %c0_57], %106 {strides = array<i32>} : memref<8x128xf32, #tpu.memory_space<vmem>>, vector<8x128xf32>,
    return
  }
  func.func @transform_0(%arg0: i32, %arg1: i32) -> (i32, i32, i32) {
    %c0_i32 = arith.constant 0 : i32
    %c0_i32_0 = arith.constant 0 : i32
    return %arg1, %arg0, %c0_i32 : i32, i32, i32
  }
  func.func @transform_1(%arg0: i32, %arg1: i32) -> (i32, i32) {
    %c0_i32 = arith.constant 0 : i32
    %c0_i32_0 = arith.constant 0 : i32
    return %arg0, %c0_i32 : i32, i32
  }
  func.func @transform_2(%arg0: i32, %arg1: i32) -> (i32, i32) {
    %c0_i32 = arith.constant 0 : i32
    %c0_i32_0 = arith.constant 0 : i32
    return %arg0, %c0_i32 : i32, i32
  }
  func.func @transform_3(%arg0: i32, %arg1: i32) -> (i32, i32, i32) {
    %c0_i32 = arith.constant 0 : i32
    %c0_i32_0 = arith.constant 0 : i32
    %c0_i32_1 = arith.constant 0 : i32
    return %arg0, %c0_i32, %c0_i32_0 : i32, i32, i32
  }
  func.func @transform_4(%arg0: i32, %arg1: i32) -> (i32, i32, i32) {
    %c0_i32 = arith.constant 0 : i32
    %c0_i32_0 = arith.constant 0 : i32
    %c0_i32_1 = arith.constant 0 : i32
    return %arg0, %c0_i32, %c0_i32_0 : i32, i32, i32
  }
  func.func @transform_5(%arg0: i32, %arg1: i32) -> (i32, i32) {
    %c0_i32 = arith.constant 0 : i32
    %c0_i32_0 = arith.constant 0 : i32
    %c0_i32_1 = arith.constant 0 : i32
    return %c0_i32, %c0_i32_0 : i32, i32
  }
  func.func @transform_6(%arg0: i32, %arg1: i32) -> (i32, i32) {
    %c0_i32 = arith.constant 0 : i32
    %c0_i32_0 = arith.constant 0 : i32
    %c0_i32_1 = arith.constant 0 : i32
    return %c0_i32, %c0_i32_0 : i32, i32
  }
  func.func @transform_7(%arg0: i32, %arg1: i32) -> (i32, i32) {
    %c0_i32 = arith.constant 0 : i32
    %c0_i32_0 = arith.constant 0 : i32
    %c0_i32_1 = arith.constant 0 : i32
    return %c0_i32, %c0_i32_0 : i32, i32
  }
  func.func @transform_8(%arg0: i32, %arg1: i32) -> (i32, i32) {
    %c0_i32 = arith.constant 0 : i32
    %c0_i32_0 = arith.constant 0 : i32
    %c0_i32_1 = arith.constant 0 : i32
    return %c0_i32, %c0_i32_0 : i32, i32
  }
  func.func @transform_9(%arg0: i32, %arg1: i32) -> (i32, i32) {
    %c0_i32 = arith.constant 0 : i32
    %c0_i32_0 = arith.constant 0 : i32
    %c0_i32_1 = arith.constant 0 : i32
    return %c0_i32, %c0_i32_0 : i32, i32
  }
  func.func @transform_10(%arg0: i32, %arg1: i32) -> (i32, i32) {
    %c0_i32 = arith.constant 0 : i32
    %c0_i32_0 = arith.constant 0 : i32
    %c0_i32_1 = arith.constant 0 : i32
    return %c0_i32, %c0_i32_0 : i32, i32
  }
  func.func @transform_11(%arg0: i32, %arg1: i32) -> (i32, i32) {
    %c0_i32 = arith.constant 0 : i32
    %c0_i32_0 = arith.constant 0 : i32
    %c0_i32_1 = arith.constant 0 : i32
    return %c0_i32, %c0_i32_0 : i32, i32
  }
  func.func @transform_12(%arg0: i32, %arg1: i32) -> (i32, i32, i32) {
    %c0_i32 = arith.constant 0 : i32
    %c0_i32_0 = arith.constant 0 : i32
    return %arg1, %arg0, %c0_i32 : i32, i32, i32
  }
  func.func @transform_13(%arg0: i32, %arg1: i32) -> (i32, i32) {
    %c0_i32 = arith.constant 0 : i32
    %c0_i32_0 = arith.constant 0 : i32
    return %arg0, %c0_i32 : i32, i32
  }
}

</mosaic_0001>

<bundles_post_ra>
// kernel: tpu_custom_call.1
= control target key start
LH: loop header
LB: loop body
LE: loop exit
PB: predicated region body
PF: predicated region fallthrough
CT: control target
= control target key end

     0   :  { %s5275_s0 = inlined_call_operand.vmem [shape: f32[1,16,128], index: 0, kind: input, shape index: {}]   ;;  %s5276_s1 = inlined_call_operand.hbm [shape: f32[16,128], index: 1, kind: input, shape index: {}, may-alias: {1,13}]   ;;  %s5277_s2 = inlined_call_operand.vmem [shape: f32[16,16], index: 2, kind: input, shape index: {}]   ;;  %s5278_s3 = inlined_call_operand.hbm [shape: f32[16,16,128], index: 3, kind: input, shape index: {}]   ;;  %s5279_s4 = inlined_call_operand.hbm [shape: f32[16,16,128], index: 4, kind: input, shape index: {}]   ;;  %s5280_s5 = inlined_call_operand.hbm [shape: f32[256,384], index: 5, kind: input, shape index: {}]   ;;  %s5281_s6 = inlined_call_operand.hbm [shape: f32[256,384], index: 6, kind: input, shape index: {}]   ;;  %s5282_s7 = inlined_call_operand.vmem [shape: f32[4,384], index: 7, kind: input, shape index: {}]   ;;  %s5283_s8 = inlined_call_operand.hbm [shape: f32[128,128], index: 8, kind: input, shape index: {}]   ;;  %s5284_s9 = inlined_call_operand.vmem [shape: f32[1,128], index: 9, kind: input, shape index: {}]   ;;  %s5285_s10 = inlined_call_operand.hbm [shape: f32[384,128], index: 10, kind: input, shape index: {}]   ;;  %s5286_s11 = inlined_call_operand.hbm [shape: f32[1,128], index: 11, kind: input, shape index: {}]   ;;  %s5287_s12 = inlined_call_operand.hbm [shape: f32[1,16,128], index: 12, kind: output, shape index: {0}]   ;;  %s5288_s13 = inlined_call_operand.hbm [shape: f32[16,128], index: 13, kind: output, shape index: {1}, may-alias: {1,13}]  }
   0x1   :  { %5326 = sst [smem:[#allocation38_spill]] %s5275_s0 }
   0x2   :  { %5327 = sst [smem:[#allocation39_spill]] %s5277_s2 }
   0x3   :  { %5328 = sst [smem:[#allocation40_spill]] %s5278_s3 }
   0x4   :  { %5329 = sst [smem:[#allocation41_spill]] %s5280_s5 }
   0x5   :  { %5330 = sst [smem:[#allocation42_spill]] %s5282_s7 }
   0x6   :  { %5331 = sst [smem:[#allocation43_spill]] %s5283_s8 }
   0x7   :  { %5332 = sst [smem:[#allocation44_spill]] %s5284_s9 }
   0x8   :  { %5333 = sst [smem:[#allocation45_spill]] %s5287_s12 }
   0x9   :  { %5334 = sst [smem:[#allocation46_spill]] %s5288_s13 }
   0xa   :  { %19 = vsyncpa [#allocation4], 0 }
   0xb   :  { %21 = vsyncpa [#allocation4 + $0x1], 0 }
   0xc   :  { %22 = vsyncpa [#allocation7], 0 }
   0xd   :  { %24 = vsyncpa [#allocation7 + $0x1], 0 }
   0xe   :  { %25 = vsyncpa [#allocation10], 0 }
   0xf   :  { %26 = vsyncpa [#allocation13], 0 }
  0x10   :  { %27 = vsyncpa [#allocation16], 0 }
  0x11   :  { %28 = vsyncpa [#allocation5], 0 }
  0x12   :  { %30 = vsyncpa [#allocation5 + $0x1], 0 }
  0x13   :  { %31 = vsyncpa [#allocation19], 0 }
  0x14   :  { %33 = vsyncpa [#allocation19 + $0x1], 0  ;;  %s4564_s25 = smov 0   ;;  %s4566_s26 = smov 0  }
  0x15   :  { %s4568_s27 = smov 0   ;;  %s4570_s28 = smov 0  }
  0x16   :  { %s4572_s29 = smov 0   ;;  %s4574_s30 = smov 0  }
  0x17 LB: > { %5335 = sst [smem:[#allocation27_spill]] %s4454_s25  ;;  %s4595_s14 = sadd.s32 4294967295, %s4474_s30   ;;  %s4474_s30 = sphi %s4574_s30, %s39_s30   ;;  %s4470_s29 = sphi %s4572_s29, %s5398_s29   ;;  %s4466_s28 = sphi %s4570_s28, %s5397_s28   ;;  %s4462_s27 = sphi %s4568_s27, %s5395_s27   ;;  %s4458_s26 = sphi %s4566_s26, %s5394_s26   ;;  %s4454_s25 = sphi %s4564_s25, %s5393_s25  }
  0x18   : > { %5336 = sst [smem:[#allocation28_spill]] %s4458_s26  ;;  %p3095_p0 = scmp.ge.s32.totalorder %s4474_s30, 1 }
  0x19   : > { %5337 = sst [smem:[#allocation29_spill]] %s4462_s27  ;;  %p5303_p1 = scmp.eq.s32.totalorder %s4595_s14, 0 }
  0x1a   : > { %5338 = sst [smem:[#allocation30_spill]] %s4466_s28  ;;  %p389_p3 = scmp.lt.s32.totalorder %s4474_s30, 3 }
  0x1b   : > { %5339 = sst [smem:[#allocation31_spill]] %s4474_s30  ;;  %s4476_s16 = smov [#allocation9]  }
  0x1c   : > { %5340 = sst [smem:[#allocation32_spill]] %s4595_s14  ;;  %p4601_p4 = pnand %p3095_p0, %p389_p3 }
  0x1d   : > { %s401_s17 = sshll.u32 %s4476_s16, 4  ;;  %s4477_s19 = smov [#allocation12]   ;;  %s4605_s17 = int_to_ptr.vmem [resolvable:$true] %s401_s17 }
  0x1e   : > { %s5341_s15 = scalar_select %p4601_p4, 1, 0 }
  0x1f   : > { %p3949_p5 = pneg %p4601_p4  ;;  %s430_s20 = sshll.u32 %s4477_s19, 4  ;;  %s4616_s20 = int_to_ptr.vmem [resolvable:$true] %s430_s20 }
  0x20   : > { %s5343_s5 = sld [smem:[#allocation41_spill]] }
  0x21   : > { %p4612_p7 = pnand %p3949_p5, %p5303_p1 }
  0x23   : > { %s5342_s18 = scalar_select %p4612_p7, 1, 0 }
  0x24   : > { %p4626_p9 = pneg %p4612_p7 }
  0x26   : > { %s4114_s23 = scalar_lea.hbm %s5343_s5, 12288 }
  0x27   : > { %p4115_p8 = scmp.ne.s32.totalorder %s5343_s5, %s4114_s23  ;;  %p4121_p12 = scmp.lt.u32.totalorder %s4114_s23, %s5343_s5 }
  0x28   : > { %s5344_s12 = scalar_select %p4626_p9, 1, 0 }
  0x29   : > { %p4117_p10 = pnand %p4626_p9, %p4115_p8 }
  0x2b   : > { %p4118_p11 = pneg %p4117_p10 }
  0x2d   : > { %p4123_p13 = pnand %p4121_p12, %p4118_p11 }
  0x2f   : > { %4126 = shalt.err (!%p4123_p13)
}
  0x30   : > { %s4127_s21 = scalar_lea.vmem %s4605_s17, 12288  ;;  %p4135_p6 = scmp.lt.s32.totalorder %s4605_s17, %s4605_s17 }
  0x31   : > { %p4128_p0 = scmp.ne.s32.totalorder %s4605_s17, %s4127_s21  ;;  %p4136_p2 = scmp.lt.s32.totalorder %s4127_s21, %s4127_s21 }
  0x33   : > { %p4130_p3 = pnand %p4128_p0, %p4626_p9  ;;  %p4137_p8 = por %p4136_p2, %p4135_p6 }
  0x35   : > { %p4131_p5 = pneg %p4130_p3 }
  0x37   : > { %p4138_p10 = pnand %p4137_p8, %p4131_p5 }
  0x39   : > { %4141 = shalt.err (!%p4138_p10)
}
  0x3a   : > { %s5293_s22 = smov 384   ;;  %s5294_s13 = smov 24  }
  0x3b   : > { %3952 = dma.hbm_to_vmem [thread:$0]  (!%p4612_p7), %s5343_s5, 12288, %s4605_s17, [#allocation10], %s5293_s22, %s5293_s22, %s5294_s13  }
  0x3c   : > { %s5345_s8 = sld [smem:[#allocation43_spill]] }
  0x42   : > { %s4142_s21 = scalar_lea.hbm %s5345_s8, 2048 }
  0x43   : > { %p4143_p2 = scmp.ne.s32.totalorder %s5345_s8, %s4142_s21  ;;  %p4149_p12 = scmp.lt.u32.totalorder %s4142_s21, %s5345_s8 }
  0x45   : > { %p4145_p6 = pnand %p4143_p2, %p4626_p9 }
  0x47   : > { %p4146_p11 = pneg %p4145_p6 }
  0x49   : > { %p4151_p13 = pnand %p4149_p12, %p4146_p11 }
  0x4b   : > { %4154 = shalt.err (!%p4151_p13)
}
  0x4c   : > { %s4155_s17 = scalar_lea.vmem %s4616_s20, 2048  ;;  %p4163_p8 = scmp.lt.s32.totalorder %s4616_s20, %s4616_s20 }
  0x4d   : > { %p4156_p0 = scmp.ne.s32.totalorder %s4616_s20, %s4155_s17  ;;  %p4164_p10 = scmp.lt.s32.totalorder %s4155_s17, %s4155_s17 }
  0x4f   : > { %p4158_p3 = pnand %p4156_p0, %p4626_p9  ;;  %p4165_p2 = por %p4164_p10, %p4163_p8 }
  0x51   : > { %p4159_p5 = pneg %p4158_p3 }
  0x53   : > { %p4166_p6 = pnand %p4165_p2, %p4159_p5 }
  0x55   : > { %4169 = shalt.err (!%p4166_p6)
}
  0x56   : > { %s5295_s2 = smov 128   ;;  %s5297_s0 = smov 8  }
  0x57   : > { %3958 = dma.hbm_to_vmem [thread:$0]  (!%p4612_p7), %s5345_s8, 2048, %s4616_s20, [#allocation13], %s5295_s2, %s5295_s2, %s5297_s0  }
  0x58   : > { %s3094_s23 = sadd.s32 4294967294, %s4474_s30   ;;  %s51_s24 = sadd.s32 1, %s4470_s29 }
  0x59   : > { %s86_s16 = sadd.s32 1, %s4462_s27  ;;  %p53_p11 = scmp.ge.s32.totalorder %s51_s24, 2 }
  0x5a   : > { %p93_p12 = scmp.ne.s32.totalorder %s4462_s27, %s4458_s26  ;;  %p94_p13 = scmp.eq.s32.totalorder %s4474_s30, 0 }
  0x5b   : > { %p99_p0 = scmp.ne.s32.totalorder %s4458_s26, %s4454_s25  ;;  %s5400_s24 = smov (%p53_p11, %s51_s24), 0 }
  0x5c   : > { %5346 = sst [smem:[#allocation33_spill]] %s5400_s24  ;;  %p95_p3 = por %p94_p13, %p93_p12 }
  0x5d   : > { %p4688_p5 = por %p5303_p1, %p99_p0  ;;  %s83_s20 = ssub.s32 %s4470_s29, %s5400_s24 }
  0x5e   : > { %p5349_p8 = scmp.eq.s32.totalorder %s4595_s14, 1  ;;  %p84_p2 = scmp.eq.s32.totalorder %s83_s20, 0 }
  0x5f   : > { %s5347_s19 = scalar_select %p4688_p5, 1, 0 }
  0x60   : > { %p4696_p10 = por %p5349_p8, %p93_p12  ;;  %p356_p6 = scmp.eq.s32.totalorder %s3094_s23, 1 }
  0x61   : > { %5348 = sst [smem:[#allocation34_spill]] %s5347_s19  ;;  %p3987_p4 = scmp.lt.s32.totalorder %s4474_s30, 2 }
  0x62   : > { %s5350_s21 = scalar_select %p4696_p10, 1, 0 }
  0x63   : > { %s4702_s17 = sand.u32 1, %s4462_s27   ;;  %p4707_p11 = por %p356_p6, %p99_p0 }
  0x64   : > { %5351 = sst [smem:[#allocation35_spill]] %s5350_s21  ;;  %p4711_p13 = pnand %p3987_p4, %p95_p3 }
  0x65   : > { %s4705_s7 = scalar_select %p84_p2, %s4462_s27, %s86_s16  }
  0x66   : > { %s5353_s9 = scalar_select %p4707_p11, 1, 0 }
  0x67   : > { %5352 = sst [smem:[#allocation36_spill]] %s4705_s7  ;;  %s507_s13 = sand.u32 1, %s4474_s30  }
  0x68   : > { %5354 = sst [smem:[#allocation37_spill]] %s5353_s9  ;;  %s5301_s2 = sshll.u32 %s4702_s17, 7 }
  0x69   : > { %s5355_s22 = scalar_select %p4711_p13, 1, 0 }
  0x6a   : > { %s5302_s20 = sshll.u32 %s4470_s29, 11  ;;  %s5356_s3 = sld [smem:[#allocation40_spill]] }
  0x6b   : > { %s511_s16 = scalar_lea.vmem [#allocation6], %s5301_s2  ;;  %s4729_s24 = scalar_lea.sflag [#allocation7], %s507_s13 }
  0x6c   : > { %s519_s8 = sshll.u32 %s511_s16, 4  ;;  %p4735_p12 = pneg %p4711_p13  ;;  %s4727_s8 = int_to_ptr.vmem [resolvable:$true] %s519_s8 }
  0x6e   : > { %s5357_s27 = scalar_select %p4735_p12, 1, 0 }
  0x70   : > { %s4723_s5 = scalar_lea.hbm %s5356_s3, %s5302_s20  ;;  %s4175_s2 = scalar_lea.hbm %s5356_s3, 4096 }
  0x71   : > { %s4170_s7 = scalar_lea.hbm %s4723_s5, 2048  ;;  %p4176_p8 = scmp.lt.u32.totalorder %s4723_s5, %s5356_s3 }
  0x72   : > { %p4171_p4 = scmp.ne.s32.totalorder %s4723_s5, %s4170_s7  ;;  %p4177_p2 = scmp.lt.u32.totalorder %s4175_s2, %s4170_s7 }
  0x73   : > { %p4179_p1 = scmp.lt.u32.totalorder %s4170_s7, %s4723_s5 }
  0x74   : > { %p4173_p0 = pnand %p4735_p12, %p4171_p4  ;;  %p4178_p6 = por %p4177_p2, %p4176_p8 }
  0x76   : > { %p4174_p3 = pneg %p4173_p0  ;;  %p4180_p11 = por %p4179_p1, %p4178_p6 }
  0x78   : > { %p4181_p10 = pnand %p4180_p11, %p4174_p3 }
  0x7a   : > { %4184 = shalt.err (!%p4181_p10)
}
  0x7b   : > { %s4185_s13 = scalar_lea.vmem %s4727_s8, 2048  ;;  %s4482_s0 = smov [#allocation6]  }
  0x7c   : > { %p4186_p4 = scmp.ne.s32.totalorder %s4727_s8, %s4185_s13  ;;  %s4190_s23 = sshll.u32 %s4482_s0, 4  ;;  %s4191_s23 = int_to_ptr.vmem [resolvable:$false] %s4190_s23 }
  0x7d   : > { %s4192_s20 = scalar_lea.vmem %s4191_s23, 4096  ;;  %p4193_p7 = scmp.lt.s32.totalorder %s4727_s8, %s4191_s23 }
  0x7e   : > { %p4188_p0 = pnand %p4186_p4, %p4735_p12  ;;  %p4194_p9 = scmp.lt.s32.totalorder %s4192_s20, %s4185_s13 }
  0x80   : > { %p4189_p5 = pneg %p4188_p0  ;;  %p4195_p8 = por %p4194_p9, %p4193_p7 }
  0x82   : > { %p4196_p2 = pnand %p4195_p8, %p4189_p5 }
  0x84   : > { %4199 = shalt.err (!%p4196_p2)
}
  0x85   : > { %s5358_s2 = smov 8   ;;  %s5359_s7 = smov 128  }
  0x86   : > { %3971 = dma.hbm_to_vmem [thread:$0]  (!%p4711_p13), %s4723_s5, 2048, %s4727_s8, %s4729_s24, %s5359_s7, %s5359_s7, %s5358_s2  }
  0x87   : > { %s5360_s16 = sshll.u32 %s4470_s29, 11  ;;  %s5361_s23 = sshll.u32 %s4702_s17, 7 }
  0x88   : > { %s4767_s13 = scalar_lea.hbm %s5279_s4, %s5360_s16  ;;  %s533_s20 = scalar_lea.vmem [#allocation8], %s5361_s23 }
  0x89   : > { %s541_s30 = sshll.u32 %s533_s20, 4  ;;  %s4483_s9 = smov [#allocation11]   ;;  %s4771_s30 = int_to_ptr.vmem [resolvable:$true] %s541_s30 }
  0x8a   : > { %s414_s25 = sshll.u32 %s4483_s9, 4  ;;  %s4484_s21 = smov [#allocation14]   ;;  %s415_s25 = int_to_ptr.vmem [resolvable:$true] %s414_s25 }
  0x8b   : > { %s446_s28 = sshll.u32 %s4484_s21, 4  ;;  %s4200_s5 = scalar_lea.hbm %s5281_s6, 12288  ;;  %s447_s28 = int_to_ptr.vmem [resolvable:$true] %s446_s28 }
  0x8c   : > { %p4201_p1 = scmp.ne.s32.totalorder %s5281_s6, %s4200_s5  ;;  %p5362_p7 = scmp.ne.s32.totalorder %s5344_s12, 0 }
  0x8d   : > { %p4207_p10 = scmp.lt.u32.totalorder %s4200_s5, %s5281_s6 }
  0x8e   : > { %p4203_p9 = pnand %p4201_p1, %p5362_p7 }
  0x90   : > { %p4204_p5 = pneg %p4203_p9 }
  0x92   : > { %p4209_p11 = pnand %p4207_p10, %p4204_p5 }
  0x94   : > { %4212 = shalt.err (!%p4209_p11)
}
  0x95   : > { %s4213_s9 = scalar_lea.vmem %s415_s25, 12288  ;;  %p4221_p0 = scmp.lt.s32.totalorder %s415_s25, %s415_s25 }
  0x96   : > { %p4214_p3 = scmp.ne.s32.totalorder %s415_s25, %s4213_s9  ;;  %p4222_p8 = scmp.lt.s32.totalorder %s4213_s9, %s4213_s9 }
  0x98   : > { %p4216_p6 = pnand %p4214_p3, %p5362_p7  ;;  %p4223_p2 = por %p4222_p8, %p4221_p0 }
  0x9a   : > { %p4217_p4 = pneg %p4216_p6 }
  0x9c   : > { %p4224_p13 = pnand %p4223_p2, %p4217_p4 }
  0x9e   : > { %4227 = shalt.err (!%p4224_p13)
}
  0x9f   : > { %p5363_p1 = scmp.ne.s32.totalorder %s5342_s18, 0  ;;  %s5364_s26 = smov 24  }
  0xa0   : > { %s5365_s14 = smov 384   ;;  %s4228_s20 = scalar_lea.hbm %s5285_s10, 6144 }
  0xa1   : > { %3955 = dma.hbm_to_vmem [thread:$0]  (!%p5363_p1), %s5281_s6, 12288, %s415_s25, [#allocation10], %s5365_s14, %s5365_s14, %s5364_s26  }
  0xa2   : > { %p4229_p9 = scmp.ne.s32.totalorder %s5285_s10, %s4228_s20  ;;  %p4235_p10 = scmp.lt.u32.totalorder %s4228_s20, %s5285_s10 }
  0xa4   : > { %p4231_p13 = pnand %p4229_p9, %p5362_p7 }
  0xa6   : > { %p4232_p5 = pneg %p4231_p13 }
  0xa8   : > { %p4237_p11 = pnand %p4235_p10, %p4232_p5 }
  0xaa   : > { %4240 = shalt.err (!%p4237_p11)
}
  0xab   : > { %s4241_s9 = scalar_lea.vmem %s447_s28, 6144  ;;  %p4249_p0 = scmp.lt.s32.totalorder %s447_s28, %s447_s28 }
  0xac   : > { %p4242_p3 = scmp.ne.s32.totalorder %s447_s28, %s4241_s9  ;;  %p4250_p8 = scmp.lt.s32.totalorder %s4241_s9, %s4241_s9 }
  0xae   : > { %p4244_p6 = pnand %p4242_p3, %p5362_p7  ;;  %p4251_p2 = por %p4250_p8, %p4249_p0 }
  0xb0   : > { %p4245_p4 = pneg %p4244_p6 }
  0xb2   : > { %p4252_p12 = pnand %p4251_p2, %p4245_p4 }
  0xb4   : > { %4255 = shalt.err (!%p4252_p12)
}
  0xb5   : > { %3961 = dma.hbm_to_vmem [thread:$0]  (!%p5363_p1), %s5285_s10, 6144, %s447_s28, [#allocation13], %s5359_s7, %s5359_s7, %s5358_s2  }
  0xb6   : > { %s4485_s14 = smov [#allocation15]   ;;  %s3102_s21 = sshll.u32 %s4702_s17, 3 }
  0xb7   : > { %s460_s19 = sshll.u32 %s4485_s14, 4  ;;  %s4256_s20 = scalar_lea.hbm %s5286_s11, 16  ;;  %s461_s19 = int_to_ptr.vmem [resolvable:$true] %s460_s19 }
  0xb8   : > { %p4257_p12 = scmp.ne.s32.totalorder %s5286_s11, %s4256_s20  ;;  %p4263_p5 = scmp.lt.u32.totalorder %s4256_s20, %s5286_s11 }
  0xba   : > { %p4259_p9 = pnand %p4257_p12, %p5362_p7 }
  0xbc   : > { %p4260_p13 = pneg %p4259_p9 }
  0xbe   : > { %p4265_p10 = pnand %p4263_p5, %p4260_p13 }
  0xc0   : > { %4268 = shalt.err (!%p4265_p10)
}
  0xc1   : > { %s4269_s28 = scalar_lea.vmem %s461_s19, 16  ;;  %s4276_s9 = scalar_lea.vmem %s461_s19, 32 }
  0xc2   : > { %p4270_p11 = scmp.ne.s32.totalorder %s461_s19, %s4269_s28  ;;  %p4277_p4 = scmp.lt.s32.totalorder %s461_s19, %s461_s19 }
  0xc3   : > { %p4278_p0 = scmp.lt.s32.totalorder %s4276_s9, %s4269_s28 }
  0xc4   : > { %p4272_p3 = pnand %p4270_p11, %p5362_p7 }
  0xc5   : > { %p4279_p8 = por %p4278_p0, %p4277_p4 }
  0xc6   : > { %p4273_p6 = pneg %p4272_p3 }
  0xc8   : > { %p4280_p2 = pnand %p4279_p8, %p4273_p6 }
  0xca   : > { %4283 = shalt.err (!%p4280_p2)
}
  0xcb   : > { %3964 = dma.hbm_to_vmem [thread:$0]  (!%p5363_p1), %s5286_s11, 16, %s461_s19, [#allocation16]  }
  0xcc   : > { %s3103_s14 = sshll.u32 %s4470_s29, 7  ;;  %s486_s20 = scalar_lea.vmem [#allocation3], %s3102_s21 }
  0xcd   : > { %s4838_s23 = scalar_lea.hbm %s5276_s1, %s3103_s14  ;;  %s493_s5 = sshll.u32 %s486_s20, 4  ;;  %s494_s5 = int_to_ptr.vmem [resolvable:$true] %s493_s5 }
  0xce   : > { %s483_s18 = scalar_lea.sflag [#allocation4], %s4702_s17  ;;  %s4284_s8 = scalar_lea.hbm %s4838_s23, 128 }
  0xcf   : > { %p4285_p7 = scmp.ne.s32.totalorder %s4838_s23, %s4284_s8  ;;  %p5366_p12 = scmp.ne.s32.totalorder %s5357_s27, 0 }
  0xd0   : > { %s4289_s16 = scalar_lea.hbm %s5276_s1, 256  ;;  %p4290_p1 = scmp.lt.u32.totalorder %s4838_s23, %s5276_s1 }
  0xd1   : > { %p4287_p9 = pnand %p4285_p7, %p5366_p12  ;;  %p4291_p5 = scmp.lt.u32.totalorder %s4289_s16, %s4284_s8 }
  0xd2   : > { %p4293_p11 = scmp.lt.u32.totalorder %s4284_s8, %s4838_s23 }
  0xd3   : > { %p4288_p13 = pneg %p4287_p9  ;;  %p4292_p10 = por %p4291_p5, %p4290_p1 }
  0xd5   : > { %p4294_p3 = por %p4293_p11, %p4292_p10 }
  0xd7   : > { %p4295_p6 = pnand %p4294_p3, %p4288_p13 }
  0xd9   : > { %4298 = shalt.err (!%p4295_p6)
}
  0xda   : > { %s4299_s17 = scalar_lea.vmem %s494_s5, 128  ;;  %s4486_s21 = smov [#allocation3]  }
  0xdb   : > { %p4300_p4 = scmp.ne.s32.totalorder %s494_s5, %s4299_s17  ;;  %s4304_s25 = sshll.u32 %s4486_s21, 4  ;;  %s4305_s25 = int_to_ptr.vmem [resolvable:$false] %s4304_s25 }
  0xdc   : > { %s4306_s26 = scalar_lea.vmem %s4305_s25, 256  ;;  %p4307_p2 = scmp.lt.s32.totalorder %s494_s5, %s4305_s25 }
  0xdd   : > { %p4302_p0 = pnand %p4300_p4, %p5366_p12  ;;  %p4308_p7 = scmp.lt.s32.totalorder %s4306_s26, %s4299_s17 }
  0xdf   : > { %p4303_p8 = pneg %p4302_p0  ;;  %p4309_p9 = por %p4308_p7, %p4307_p2 }
  0xe1   : > { %p4310_p1 = pnand %p4309_p9, %p4303_p8 }
  0xe3   : > { %4313 = shalt.err (!%p4310_p1)
}
  0xe4   : > { %p5367_p5 = scmp.ne.s32.totalorder %s5355_s22, 0  ;;  %s4314_s14 = scalar_lea.hbm %s4767_s13, 2048 }
  0xe5   : > { %p4315_p13 = scmp.ne.s32.totalorder %s4767_s13, %s4314_s14  ;;  %s4319_s20 = scalar_lea.hbm %s5279_s4, 4096 }
  0xe6   : > { %3968 = dma.hbm_to_vmem [thread:$0]  (!%p5367_p5), %s4838_s23, 128, %s494_s5, %s483_s18  }
  0xe7   : > { %p4317_p10 = pnand %p4315_p13, %p5366_p12  ;;  %p4320_p3 = scmp.lt.u32.totalorder %s4767_s13, %s5279_s4 }
  0xe8   : > { %p4321_p6 = scmp.lt.u32.totalorder %s4319_s20, %s4314_s14  ;;  %p4323_p0 = scmp.lt.u32.totalorder %s4314_s14, %s4767_s13 }
  0xe9   : > { %p4318_p11 = pneg %p4317_p10 }
  0xea   : > { %p4322_p4 = por %p4321_p6, %p4320_p3 }
  0xec   : > { %p4324_p8 = por %p4323_p0, %p4322_p4 }
  0xee   : > { %p4325_p2 = pnand %p4324_p8, %p4318_p11 }
  0xf0   : > { %4328 = shalt.err (!%p4325_p2)
}
  0xf1   : > { %s4329_s23 = scalar_lea.vmem %s4771_s30, 2048  ;;  %s4487_s5 = smov [#allocation8]  }
  0xf2   : > { %p4330_p7 = scmp.ne.s32.totalorder %s4771_s30, %s4329_s23  ;;  %s4334_s18 = sshll.u32 %s4487_s5, 4  ;;  %s4335_s18 = int_to_ptr.vmem [resolvable:$false] %s4334_s18 }
  0xf3   : > { %s4336_s3 = scalar_lea.vmem %s4335_s18, 4096  ;;  %p4337_p13 = scmp.lt.s32.totalorder %s4771_s30, %s4335_s18 }
  0xf4   : > { %p4332_p9 = pnand %p4330_p7, %p5366_p12  ;;  %p4338_p10 = scmp.lt.s32.totalorder %s4336_s3, %s4329_s23 }
  0xf6   : > { %p4333_p1 = pneg %p4332_p9  ;;  %p4339_p3 = por %p4338_p10, %p4337_p13 }
  0xf8   : > { %p4340_p6 = pnand %p4339_p3, %p4333_p1 }
  0xfa   : > { %4343 = shalt.err (!%p4340_p6)
}
  0xfb   : > { %3974 = dma.hbm_to_vmem [thread:$0]  (!%p5367_p5), %s4767_s13, 2048, %s4771_s30, %s4729_s24, %s5359_s7, %s5359_s7, %s5358_s2  }
  0xfc   : > { %p5368_p12 = scmp.ne.s32.totalorder %s5341_s15, 0 }
  0xfd   : > { %s5369_s27 = sld [smem:[#allocation28_spill]] (!%p5368_p12) }
  0xfe   : > { %553 = sbr.rel (%p5368_p12) target bundleno = 2122 (0x84a), region = 68  ;;  %s5370_s16 = sld [smem:[#allocation34_spill]] (!%p5368_p12) }
 0x103   : > { %s4886_s28 = sand.u32 (!%p5368_p12), 1, %s5369_s27  }
 0x104   : > { %s4889_s9 = sshll.u32 (!%p5368_p12), %s4886_s28, 3  ;;  %s556_s22 = scalar_lea.sflag (!%p5368_p12), [#allocation4], %s4886_s28 }
 0x105   : > { %s559_s17 = scalar_lea.vmem [#allocation3], %s4889_s9  ;;  %p5371_p11 = scmp.ne.s32.totalorder %s5370_s16, 0 }
 0x107   : > { %4425 = dma.done.wait (%p5371_p11), %s556_s22, 128  }
 0x108   : > { %4427 = vsyncadd (%p5371_p11), %s556_s22, 4294967168  ;;  %s5372_s30 = sld [smem:[#allocation32_spill]]  ;;  %s3114_s24 = sshll.u32 %s4886_s28, 7 }
 0x109   : > { %s4899_s7 = scalar_lea.vmem [#allocation6], %s3114_s24 }
 0x10e   : > { %s564_s15 = sand.u32 1, %s5372_s30  }
 0x10f   : > { %s565_s2 = scalar_lea.sflag [#allocation7], %s564_s15 }
 0x110   : > { %4429 = dma.done.wait (%p5371_p11), %s565_s2, 4096  }
 0x111   : > { %4431 = vsyncadd (%p5371_p11), %s565_s2, 4294963200  ;;  %s4905_s13 = scalar_lea.vmem [#allocation8], %s3114_s24  ;;  %p5373_p5 = scmp.eq.s32.totalorder %s5372_s30, 0 }
 0x113   : > { %4433 = dma.done.wait (%p5373_p5), [#allocation10], 24576   ;;  %p5374_p4 = pmov %p5373_p5 }
 0x115   : > { %4435 = vsyncadd (%p5374_p4), [#allocation10], 4294942720  ;;  %p5375_p0 = pmov %p5374_p4 }
 0x117   : > { %4437 = dma.done.wait (%p5375_p0), [#allocation13], 8192   ;;  %p5376_p8 = pmov %p5375_p0 }
 0x118   : > { %p5377_p2 = pmov %p5375_p0 }
 0x119   : > { %4439 = vsyncadd (%p5376_p8), [#allocation13], 4294959104 }
 0x11a   : > { %4441 = dma.done.wait (%p5377_p2), [#allocation16], 16   ;;  %p5378_p7 = pmov %p5375_p0 }
 0x11b   : > { %v4488_v0 = vmov 0.0|0.0   ;;  %v4489_v1 = vmov 0.0   ;;  %vm4490_vm0 = vmmov 0   ;;  %v730_v2 = vld [vmem:[#allocation9 + $0x8] sm:$0xff]  ;;  %v733_v3 = vld [vmem:[#allocation9 + $0x20] sm:$0xff]  ;;  %v732_v6 = vld [vmem:[#allocation9 + $0x18] sm:$0xff] }
 0x11c   : > { %4443 = vsyncadd (%p5378_p7), [#allocation16], 4294967280  ;;  %3611 = vmatprep.subr.bf16.mxu1 %v4488_v0  ;;  %857 = vmatprep.mubr.f32.mxu0 %v4489_v1  ;;  %v729_v4 = vld [vmem:[#allocation9] sm:$0xff]  ;;  %v3579_v5 = vpack.c.bf16 %v733_v3, %v730_v2  ;;  %v736_v7 = vld [vmem:[#allocation9 + $0x38] sm:$0xff]  ;;  %s5379_s21 = sld [smem:[#allocation30_spill]]  ;;  %s5380_s12 = sld [smem:[#allocation38_spill]] }
 0x11d   : > { %3345 = vmatprep.mubr.msk.f32.mxu1 %vm4490_vm0, %v4489_v1  ;;  %v739_v8 = vld [vmem:[#allocation9 + $0x50] sm:$0xff]  ;;  %v3581_v9 = vpack.c.bf16 %v732_v6, %v729_v4  ;;  %v738_v12 = vld [vmem:[#allocation9 + $0x48] sm:$0xff]  ;;  %v745_v14 = vld [vmem:[#allocation9 + $0x80] sm:$0xff]  ;;  %s5381_s23 = sld [smem:[#allocation42_spill]]  ;;  %s5382_s16 = sld [smem:[#allocation44_spill]]  ;;  %vm1451_vm1 = vcmask 130112  }
 0x11e   : > { %v3583_v10 = vpack.c.bf16 %v739_v8, %v736_v7  ;;  %v735_v11 = vld [vmem:[#allocation9 + $0x30] sm:$0xff]  ;;  %v742_v13 = vld [vmem:[#allocation9 + $0x68] sm:$0xff]  ;;  %3580 = vmatprep.subr.bf16.mxu0 %v3579_v5  ;;  %v741_v17 = vld [vmem:[#allocation9 + $0x60] sm:$0xff]  ;;  %vm1516_vm2 = vcmask 1041409   ;;  %vm1518_vm3 = vcmask 1042434   ;;  %vm1520_vm4 = vcmask 1043459  }
 0x11f   : > { %3582 = vmatpush1.bf16.msra.mxu0 %v3581_v9  ;;  %v3585_v15 = vpack.c.bf16 %v738_v12, %v735_v11  ;;  %v3587_v16 = vpack.c.bf16 %v745_v14, %v742_v13  ;;  %v744_v18 = vld [vmem:[#allocation9 + $0x78] sm:$0xff]  ;;  %v751_v20 = vld [vmem:[#allocation9 + $0xb0] sm:$0xff]  ;;  %v750_v24 = vld [vmem:[#allocation9 + $0xa8] sm:$0xff]  ;;  %s5383_s30 = sld [smem:[#allocation39_spill]]  ;;  %vm1522_vm5 = vcmask 1044484   ;;  %vm1524_vm6 = vcmask 1045509  }
 0x120   : > { %3584 = vmatprep.subr.bf16.mxu0 %v3583_v10  ;;  %v748_v19 = vld [vmem:[#allocation9 + $0x98] sm:$0xff]  ;;  %v3589_v21 = vpack.c.bf16 %v744_v18, %v741_v17  ;;  %v747_v22 = vld [vmem:[#allocation9 + $0x90] sm:$0xff]  ;;  %v734_v26 = vld [vmem:[#allocation9 + $0x28] sm:$0xff]  ;;  %vm1526_vm7 = vcmask 1046534   ;;  %vm1528_vm8 = vcmask 1047559   ;;  %vm1532_vm10 = vcmask 130048  }
 0x121   : > { %v3591_v23 = vpack.c.bf16 %v751_v20, %v748_v19  ;;  %v731_v25 = vld [vmem:[#allocation9 + $0x10] sm:$0xff]  ;;  %v754_v27 = vld [vmem:[#allocation9 + $0xc8] sm:$0xff]  ;;  %v757_v28 = vld [vmem:[#allocation9 + $0xe0] sm:$0xff]  ;;  %v3593_v32 = vpack.c.bf16 %v750_v24, %v747_v22  ;;  %s5385_s8 = sld [smem:[#allocation46_spill]]  ;;  %s2832_s18 = scalar_lea.sflag [#allocation19], %s4886_s28 }
 0x122   : > { %v3612_v29 = vpack.c.bf16 %v734_v26, %v731_v25  ;;  %v737_v30 = vld [vmem:[#allocation9 + $0x40] sm:$0xff]  ;;  %v740_v31 = vld [vmem:[#allocation9 + $0x58] sm:$0xff]  ;;  %v3595_v34 = vpack.c.bf16 %v757_v28, %v754_v27  ;;  %v743_v37 = vld [vmem:[#allocation9 + $0x70] sm:$0xff]  ;;  %p669_p9 = scmp.lt.s32.totalorder %s5379_s21, 1  ;;  %s3144_s14 = sshll.u32 %s5379_s21, 7 }
 0x123   : > { %3586 = vmatpush1.bf16.msra.mxu0 %v3585_v15  ;;  %v3615_v33 = vpack.c.bf16 %v740_v31, %v737_v30  ;;  %v753_v35 = vld [vmem:[#allocation9 + $0xc0] sm:$0xff]  ;;  %v756_v36 = vld [vmem:[#allocation9 + $0xd8] sm:$0xff]  ;;  %v763_v39 = vld [vmem:[#allocation9 + $0x110] sm:$0xff]  ;;  %s4492_s27 = smov [#allocation18]  }
 0x124   : > { %3588 = vmatprep.subr.bf16.mxu0 %v3587_v16  ;;  %3613 = vmatpush3.bf16.msra.mxu1 %v3612_v29  ;;  %v760_v38 = vld [vmem:[#allocation9 + $0xf8] sm:$0xff]  ;;  %v746_v40 = vld [vmem:[#allocation9 + $0x88] sm:$0xff]  ;;  %v3597_v41 = vpack.c.bf16 %v756_v36, %v753_v35  ;;  %v759_v42 = vld [vmem:[#allocation9 + $0xf0] sm:$0xff]  ;;  %s4930_s25 = scalar_select %p669_p9, %s5379_s21, 1 }
 0x125   : > { %3614 = vmatprep.subr.bf16.mxu1 %v4488_v0  ;;  %v3618_v43 = vpack.c.bf16 %v746_v40, %v743_v37  ;;  %v3599_v44 = vpack.c.bf16 %v763_v39, %v760_v38  ;;  %v762_v45 = vld [vmem:[#allocation9 + $0x108] sm:$0xff]  ;;  %v749_v46 = vld [vmem:[#allocation9 + $0xa0] sm:$0xff]  ;;  %v752_v47 = vld [vmem:[#allocation9 + $0xb8] sm:$0xff] }
 0x126   : > { %v766_v48 = vld [vmem:[#allocation9 + $0x128] sm:$0xff]  ;;  %v769_v49 = vld [vmem:[#allocation9 + $0x140] sm:$0xff]  ;;  %v3601_v50 = vpack.c.bf16 %v762_v45, %v759_v42  ;;  %v3621_v52 = vpack.c.bf16 %v752_v47, %v749_v46  ;;  %v768_v54 = vld [vmem:[#allocation9 + $0x138] sm:$0xff]  ;;  %s3123_s26 = sshll.u32 %s4930_s25, 3  ;;  %s5384_s25 = sld [smem:[#allocation35_spill]] }
 0x127   : > { %3590 = vmatpush1.bf16.msra.mxu0 %v3589_v21  ;;  %v765_v51 = vld [vmem:[#allocation9 + $0x120] sm:$0xff]  ;;  %v3603_v53 = vpack.c.bf16 %v769_v49, %v766_v48  ;;  %v755_v55 = vld [vmem:[#allocation9 + $0xd0] sm:$0xff]  ;;  %v758_v56 = vld [vmem:[#allocation9 + $0xe8] sm:$0xff]  ;;  %s4939_s20 = scalar_lea.vmem %s5380_s12, %s3123_s26  ;;  %s678_s15 = scalar_lea.vmem %s5383_s30, %s3123_s26 }
 0x128   : > { %3592 = vmatprep.subr.bf16.mxu0 %v3591_v23  ;;  %3616 = vmatpush3.bf16.msra.mxu1 %v3615_v33  ;;  %v772_v57 = vld [vmem:[#allocation9 + $0x158] sm:$0xff]  ;;  %v775_v58 = vld [vmem:[#allocation9 + $0x170] sm:$0xff]  ;;  %v3605_v59 = vpack.c.bf16 %v768_v54, %v765_v51  ;;  %v3624_v61 = vpack.c.bf16 %v758_v56, %v755_v55  ;;  %v774_v63 = vld [vmem:[#allocation9 + $0x168] sm:$0xff]  ;;  %s666_s26 = scalar_lea.vmem [#allocation18], %s4889_s9  ;;  %s5200_s19 = scalar_lea.hbm %s5385_s8, %s3144_s14 }
 0x129   : > { %3617 = vmatprep.subr.bf16.mxu1 %v4488_v0  ;;  %v771_v60 = vld [vmem:[#allocation9 + $0x150] sm:$0xff]  ;;  %v3607_v62 = vpack.c.bf16 %v775_v58, %v772_v57  ;;  %v761_v2 = vld [vmem:[#allocation9 + $0x100] sm:$0xff]  ;;  %v764_v3 = vld [vmem:[#allocation9 + $0x118] sm:$0xff]  ;;  %s2860_s5 = sshll.u32 %s666_s26, 4  ;;  %s2861_s5 = int_to_ptr.vmem [resolvable:$true] %s2860_s5 }
 0x12a   : > { %v935_v4 = vld [vmem:[#allocation9 + $0x188] sm:$0xff]  ;;  %v938_v5 = vld [vmem:[#allocation9 + $0x1a0] sm:$0xff]  ;;  %v3609_v6 = vpack.c.bf16 %v774_v63, %v771_v60  ;;  %v3627_v8 = vpack.c.bf16 %v764_v3, %v761_v2  ;;  %v937_v10 = vld [vmem:[#allocation9 + $0x198] sm:$0xff]  ;;  %s4344_s3 = scalar_lea.vmem %s2861_s5, 128 }
 0x12b   : > { %3594 = vmatpush1.bf16.msra.mxu0 %v3593_v32  ;;  %v934_v7 = vld [vmem:[#allocation9 + $0x180] sm:$0xff]  ;;  %v3635_v9 = vpack.c.bf16 %v938_v5, %v935_v4  ;;  %v767_v11 = vld [vmem:[#allocation9 + $0x130] sm:$0xff]  ;;  %v770_v12 = vld [vmem:[#allocation9 + $0x148] sm:$0xff]  ;;  %p4345_p1 = scmp.ne.s32.totalorder %s2861_s5, %s4344_s3 }
 0x12c   : > { %3596 = vmatprep.subr.bf16.mxu0 %v3595_v34  ;;  %3619 = vmatpush3.bf16.msra.mxu1 %v3618_v43  ;;  %v941_v13 = vld [vmem:[#allocation9 + $0x1b8] sm:$0xff]  ;;  %v944_v14 = vld [vmem:[#allocation9 + $0x1d0] sm:$0xff]  ;;  %v3637_v16 = vpack.c.bf16 %v937_v10, %v934_v7  ;;  %v3630_v18 = vpack.c.bf16 %v770_v12, %v767_v11  ;;  %v943_v20 = vld [vmem:[#allocation9 + $0x1c8] sm:$0xff]  ;;  %p5386_p13 = scmp.ne.s32.totalorder %s5384_s25, 0 }
 0x12d   : > { %3620 = vmatprep.subr.bf16.mxu1 %v4488_v0  ;;  %v687_v15 = vld [vmem:[%s4939_s20] sm:$0xff]  ;;  %v3639_v19 = vpack.c.bf16 %v944_v14, %v941_v13  ;;  %v773_v21 = vld [vmem:[#allocation9 + $0x160] sm:$0xff]  ;;  %v776_v22 = vld [vmem:[#allocation9 + $0x178] sm:$0xff] }
 0x12e   : > { %v940_v17 = vld [vmem:[#allocation9 + $0x1b0] sm:$0xff]  ;;  %v947_v23 = vld [vmem:[#allocation9 + $0x1e8] sm:$0xff]  ;;  %v950_v24 = vld [vmem:[#allocation9 + $0x200] sm:$0xff]  ;;  %v3633_v27 = vpack.c.bf16 %v776_v22, %v773_v21  ;;  %p4346_p10 = pnand %p4345_p1, %p5386_p13 }
 0x12f   : > { %3598 = vmatpush1.bf16.msra.mxu0 %v3597_v41  ;;  %v3641_v25 = vpack.c.bf16 %v943_v20, %v940_v17  ;;  %v946_v26 = vld [vmem:[#allocation9 + $0x1e0] sm:$0xff]  ;;  %v3643_v28 = vpack.c.bf16 %v950_v24, %v947_v23  ;;  %v949_v29 = vld [vmem:[#allocation9 + $0x1f8] sm:$0xff]  ;;  %v936_v30 = vld [vmem:[#allocation9 + $0x190] sm:$0xff] }
 0x130   : > { %3600 = vmatprep.subr.bf16.mxu0 %v3599_v44  ;;  %3622 = vmatpush3.bf16.msra.mxu1 %v3621_v52  ;;  %v939_v31 = vld [vmem:[#allocation9 + $0x1a8] sm:$0xff]  ;;  %v953_v32 = vld [vmem:[#allocation9 + $0x218] sm:$0xff]  ;;  %v956_v33 = vld [vmem:[#allocation9 + $0x230] sm:$0xff]  ;;  %v3645_v34 = vpack.c.bf16 %v949_v29, %v946_v26  ;;  %p4347_p3 = pneg %p4346_p10 }
 0x131   : > { %3623 = vmatprep.subr.bf16.mxu1 %v4488_v0  ;;  %v952_v35 = vld [vmem:[#allocation9 + $0x210] sm:$0xff]  ;;  %v3668_v36 = vpack.c.bf16 %v939_v31, %v936_v30  ;;  %v3647_v37 = vpack.c.bf16 %v956_v33, %v953_v32  ;;  %v955_v38 = vld [vmem:[#allocation9 + $0x228] sm:$0xff]  ;;  %v942_v39 = vld [vmem:[#allocation9 + $0x1c0] sm:$0xff] }
 0x132   : > { %v945_v40 = vld [vmem:[#allocation9 + $0x1d8] sm:$0xff]  ;;  %v959_v41 = vld [vmem:[#allocation9 + $0x248] sm:$0xff]  ;;  %v962_v42 = vld [vmem:[#allocation9 + $0x260] sm:$0xff]  ;;  %v3649_v43 = vpack.c.bf16 %v955_v38, %v952_v35 }
 0x133   : > { %3602 = vmatpush1.bf16.msra.mxu0 %v3601_v50  ;;  %v958_v44 = vld [vmem:[#allocation9 + $0x240] sm:$0xff]  ;;  %v3671_v45 = vpack.c.bf16 %v945_v40, %v942_v39  ;;  %v3651_v46 = vpack.c.bf16 %v962_v42, %v959_v41  ;;  %v961_v47 = vld [vmem:[#allocation9 + $0x258] sm:$0xff]  ;;  %v948_v48 = vld [vmem:[#allocation9 + $0x1f0] sm:$0xff] }
 0x134   : > { %3604 = vmatprep.subr.bf16.mxu0 %v3603_v53  ;;  %3625 = vmatpush3.bf16.msra.mxu1 %v3624_v61  ;;  %v951_v49 = vld [vmem:[#allocation9 + $0x208] sm:$0xff]  ;;  %v965_v50 = vld [vmem:[#allocation9 + $0x278] sm:$0xff]  ;;  %v968_v51 = vld [vmem:[#allocation9 + $0x290] sm:$0xff]  ;;  %v3653_v52 = vpack.c.bf16 %v961_v47, %v958_v44 }
 0x135   : > { %3626 = vmatprep.subr.bf16.mxu1 %v4488_v0  ;;  %v964_v53 = vld [vmem:[#allocation9 + $0x270] sm:$0xff]  ;;  %v3674_v54 = vpack.c.bf16 %v951_v49, %v948_v48  ;;  %v3655_v55 = vpack.c.bf16 %v968_v51, %v965_v50  ;;  %v967_v56 = vld [vmem:[#allocation9 + $0x288] sm:$0xff]  ;;  %v954_v57 = vld [vmem:[#allocation9 + $0x220] sm:$0xff]  ;;  %v778_v50 = vlaneseq }
 0x136   : > { %v957_v58 = vld [vmem:[#allocation9 + $0x238] sm:$0xff]  ;;  %v974_v60 = vld [vmem:[#allocation9 + $0x2c0] sm:$0xff]  ;;  %v3657_v61 = vpack.c.bf16 %v967_v56, %v964_v53  ;;  %v960_v4 = vld [vmem:[#allocation9 + $0x250] sm:$0xff] }
 0x137   : > { %3606 = vmatpush1.bf16.msra.mxu0 %v3605_v59  ;;  %v971_v59 = vld [vmem:[#allocation9 + $0x2a8] sm:$0xff]  ;;  %v3677_v63 = vpack.c.bf16 %v957_v58, %v954_v57  ;;  %v973_v3 = vld [vmem:[#allocation9 + $0x2b8] sm:$0xff]  ;;  %v980_v7 = vld [vmem:[#allocation9 + $0x2f0] sm:$0xff]  ;;  %v4976_v51 = vshrl.u32 %v778_v50, 7 }
 0x138   : > { %3608 = vmatprep.subr.bf16.mxu0 %v3607_v62  ;;  %3628 = vmatpush3.bf16.msra.mxu1 %v3627_v8  ;;  %v970_v62 = vld [vmem:[#allocation9 + $0x2a0] sm:$0xff]  ;;  %v3659_v2 = vpack.c.bf16 %v974_v60, %v971_v59  ;;  %v963_v5 = vld [vmem:[#allocation9 + $0x268] sm:$0xff]  ;;  %v969_v14 = vld [vmem:[#allocation9 + $0x298] sm:$0xff] }
 0x139   : > { %3629 = vmatprep.subr.bf16.mxu1 %v4488_v0  ;;  %v3661_v8 = vpack.c.bf16 %v973_v3, %v970_v62  ;;  %v3680_v10 = vpack.c.bf16 %v963_v5, %v960_v4  ;;  %v979_v12 = vld [vmem:[#allocation9 + $0x2e8] sm:$0xff]  ;;  %v966_v13 = vld [vmem:[#allocation9 + $0x280] sm:$0xff]  ;;  %v972_v17 = vld [vmem:[#allocation9 + $0x2b0] sm:$0xff] }
 0x13a   : > { %v978_v21 = vld [vmem:[#allocation9 + $0x2e0] sm:$0xff]  ;;  %v981_v22 = vld [vmem:[#allocation9 + $0x2f8] sm:$0xff]  ;;  %v1165_v31 = vld [vmem:[#allocation12 + $0x28] sm:$0xff] }
 0x13b   : > { %3610 = vmatpush1.bf16.msra.mxu0 %v3609_v6  ;;  %v977_v6 = vld [vmem:[#allocation9 + $0x2d8] sm:$0xff]  ;;  %v3689_v23 = vpack.c.bf16 %v981_v22, %v978_v21  ;;  %v1160_v24 = vld [vmem:[#allocation12] sm:$0xff]  ;;  %v1166_v33 = vld [vmem:[#allocation12 + $0x30] sm:$0xff] }
 0x13c   : > { %3636 = vmatprep.subr.bf16.mxu0 %v3635_v9  ;;  %3631 = vmatpush3.bf16.msra.mxu1 %v3630_v18  ;;  %v976_v9 = vld [vmem:[#allocation9 + $0x2d0] sm:$0xff]  ;;  %v3663_v11 = vpack.c.bf16 %v980_v7, %v977_v6  ;;  %v975_v18 = vld [vmem:[#allocation9 + $0x2c8] sm:$0xff]  ;;  %v1164_v30 = vld [vmem:[#allocation12 + $0x20] sm:$0xff] }
 0x13d   : > { %3632 = vmatprep.subr.bf16.mxu1 %v4488_v0  ;;  %v3686_v20 = vpack.c.bf16 %v975_v18, %v972_v17  ;;  %v3698_v32 = vpack.c.bf16 %v1165_v31, %v1164_v30  ;;  %v1170_v39 = vld [vmem:[#allocation12 + $0x50] sm:$0xff]  ;;  %v1171_v40 = vld [vmem:[#allocation12 + $0x58] sm:$0xff]  ;;  %v1172_v42 = vld [vmem:[#allocation12 + $0x60] sm:$0xff] }
 0x13e   : > { %858 = vmatmul.mubr.f32.vlgmr.msra.gmra.mrb[0].mxu0 %v687_v15  ;;  %v3707_v41 = vpack.c.bf16 %v1171_v40, %v1170_v39  ;;  %v3125_v53 = vld [vmem:[%s5381_s23 + $0x1] ss:$4 sm:$0x7]  ;;  %v707_v39 = vld [vmem:[%s4905_s13 + $0x8] sm:$0xff] }
 0x13f   : > { %3638 = vmatpush1.bf16.msra.mxu0 %v3637_v16  ;;  %1062 = vmatprep.mubr.f32.mxu0 %v4489_v1  ;;  %v3683_v16 = vpack.c.bf16 %v969_v14, %v966_v13 }
 0x140   : > { %3640 = vmatprep.subr.bf16.mxu0 %v3639_v19  ;;  %3634 = vmatpush3.bf16.msra.mxu1 %v3633_v27  ;;  %v4956_v19 = vld [vmem:[%s559_s17] sm:$0xff] }
 0x141   : > { %3667 = vmatprep.subr.bf16.mxu1 %v4488_v0  ;;  %v1162_v27 = vld [vmem:[#allocation12 + $0x10] sm:$0xff] }
 0x143   : > { %3642 = vmatpush1.bf16.msra.mxu0 %v3641_v25  ;;  %3346 = vmatmul.mubr.f32.vlgmr.msra.gmra.mrb[0].mxu1 %v687_v15  ;;  %v3665_v15 = vpack.c.bf16 %v979_v12, %v976_v9  ;;  %v1161_v25 = vld [vmem:[#allocation12 + $0x8] sm:$0xff] }
 0x144   : > { %3644 = vmatprep.subr.bf16.mxu0 %v3643_v28  ;;  %3669 = vmatpush3.bf16.msra.mxu1 %v3668_v36  ;;  %v3692_v26 = vpack.c.bf16 %v1161_v25, %v1160_v24  ;;  %v1163_v28 = vld [vmem:[#allocation12 + $0x18] sm:$0xff]  ;;  %v1168_v36 = vld [vmem:[#allocation12 + $0x40] sm:$0xff] }
 0x145   : > { %3670 = vmatprep.subr.bf16.mxu1 %v4488_v0  ;;  %3380 = vmatprep.mubr.msk.f32.mxu1 %vm4490_vm0, %v4489_v1  ;;  %v3695_v29 = vpack.c.bf16 %v1163_v28, %v1162_v27  ;;  %v4491_v27 = vmov 1966171168  }
 0x146   : > { %v1249_v28 = vunpack.c.l.s4 %v4491_v27  ;;  %v718_v27 = vld [vmem:[%s4905_s13 + $0x60] sm:$0xff] }
 0x147   : > { %3646 = vmatpush1.bf16.msra.mxu0 %v3645_v34  ;;  %v1167_v34 = vld [vmem:[#allocation12 + $0x38] sm:$0xff] }
 0x148   : > { %3648 = vmatprep.subr.bf16.mxu0 %v3647_v37  ;;  %3672 = vmatpush3.bf16.msra.mxu1 %v3671_v45  ;;  %v3701_v35 = vpack.c.bf16 %v1167_v34, %v1166_v33  ;;  %v1169_v37 = vld [vmem:[#allocation12 + $0x48] sm:$0xff]  ;;  %v1174_v45 = vld [vmem:[#allocation12 + $0x70] sm:$0xff] }
 0x149   : > { %3673 = vmatprep.subr.bf16.mxu1 %v4488_v0  ;;  %v3704_v38 = vpack.c.bf16 %v1169_v37, %v1168_v36  ;;  %v706_v37 = vld [vmem:[%s4905_s13] sm:$0xff] }
 0x14b   : > { %3650 = vmatpush1.bf16.msra.mxu0 %v3649_v43  ;;  %v1173_v43 = vld [vmem:[#allocation12 + $0x68] sm:$0xff] }
 0x14c   : > { %3652 = vmatprep.subr.bf16.mxu0 %v3651_v46  ;;  %3675 = vmatpush3.bf16.msra.mxu1 %v3674_v54  ;;  %v3710_v44 = vpack.c.bf16 %v1173_v43, %v1172_v42  ;;  %v1175_v46 = vld [vmem:[#allocation12 + $0x78] sm:$0xff]  ;;  %v708_v43 = vld [vmem:[%s4905_s13 + $0x10] sm:$0xff] }
 0x14d   : > { %3676 = vmatprep.subr.bf16.mxu1 %v4488_v0  ;;  %v3713_v47 = vpack.c.bf16 %v1175_v46, %v1174_v45  ;;  %v722_v54 = vld [vmem:[%s5381_s23] ss:$4 sm:$0x7] }
 0x14e   : > { %v709_v45 = vld [vmem:[%s4905_s13 + $0x18] sm:$0xff] }
 0x14f   : > { %3654 = vmatpush1.bf16.msra.mxu0 %v3653_v52  ;;  %v4979_v52 = vsub.s32 0, %v4976_v51 }
 0x150   : > { %3656 = vmatprep.subr.bf16.mxu0 %v3655_v55  ;;  %3678 = vmatpush3.bf16.msra.mxu1 %v3677_v63  ;;  %v4988_v55 = vsub.s32 1, %v4976_v51 }
 0x151   : > { %3679 = vmatprep.subr.bf16.mxu1 %v4488_v0  ;;  %v781_v56 = vrot.slane %v722_v54, %v4979_v52  ;;  %v986_v57 = vrot.slane %v3125_v53, %v4979_v52 }
 0x152   : > { %v785_v58 = vrot.slane %v722_v54, %v4988_v55  ;;  %v990_v59 = vrot.slane %v3125_v53, %v4988_v55 }
 0x153   : > { %3658 = vmatpush1.bf16.msra.mxu0 %v3657_v61  ;;  %v3907_v60 = vadd.f32 %v986_v57, %v781_v56  ;;  %v711_v56 = vld [vmem:[%s4905_s13 + $0x28] sm:$0xff] }
 0x154   : > { %3660 = vmatprep.subr.bf16.mxu0 %v3659_v2  ;;  %3681 = vmatpush3.bf16.msra.mxu1 %v3680_v10  ;;  %v3909_v62 = vadd.f32 %v990_v59, %v785_v58  ;;  %v4995_v10 = vsub.s32 2, %v4976_v51 }
 0x155   : > { %3682 = vmatprep.subr.bf16.mxu1 %v4488_v0 }
 0x156   : > { %v789_v13 = vrot.slane %v722_v54, %v4995_v10 }
 0x157   : > { %3662 = vmatpush1.bf16.msra.mxu0 %v3661_v8 }
 0x158   : > { %3664 = vmatprep.subr.bf16.mxu0 %v3663_v11  ;;  %3684 = vmatpush3.bf16.msra.mxu1 %v3683_v16  ;;  %v994_v11 = vrot.slane %v3125_v53, %v4995_v10  ;;  %v710_v53 = vld [vmem:[%s4905_s13 + $0x20] sm:$0xff] }
 0x159   : > { %3685 = vmatprep.subr.bf16.mxu1 %v4488_v0 }
 0x15b   : > { %3666 = vmatpush1.bf16.msra.mxu0 %v3665_v15 }
 0x15c   : > { %3691 = vmatprep.subr.bf16.mxu0 %v4488_v0  ;;  %3687 = vmatpush3.bf16.msra.mxu1 %v3686_v20 }
 0x15d   : > { %3688 = vmatprep.subr.bf16.mxu1 %v4488_v0 }
 0x15e   : > { %1063 = vmatmul.mubr.f32.vlgmr.msra.gmra.mrb[0].mxu0 %v4956_v19 }
 0x15f   : > { %3415 = vmatprep.mubr.msk.f32.mxu0 %vm4490_vm0, %v4489_v1  ;;  %3693 = vmatpush3.bf16.msra.mxu0 %v3692_v26 }
 0x160   : > { %3690 = vmatpush3.bf16.msra.mxu1 %v3689_v23  ;;  %3694 = vmatprep.subr.bf16.mxu0 %v4488_v0 }
 0x161   : > { %3715 = vmatprep.subr.bf16.mxu1 %v4488_v0 }
 0x163   : > { %3381 = vmatmul.mubr.f32.vlgmr.msra.gmra.mrb[2].mxu1 %v4956_v19  ;;  %3696 = vmatpush3.bf16.msra.mxu0 %v3695_v29  ;;  %v1250_v29 = vunpack.c.0.s8 %v1249_v28 }
 0x164   : > { %3422 = vmatprep.mubr.msk.f32.mxu1 %vm4490_vm0, %v4489_v1  ;;  %3697 = vmatprep.subr.bf16.mxu0 %v4488_v0 }
 0x165   : > { %v5005_v30 = vsub.s32 %v1250_v29, %v4976_v51 }
 0x167   : > { %3699 = vmatpush3.bf16.msra.mxu0 %v3698_v32 }
 0x168   : > { %3700 = vmatprep.subr.bf16.mxu0 %v4488_v0 }
 0x16b   : > { %3702 = vmatpush3.bf16.msra.mxu0 %v3701_v35 }
 0x16c   : > { %3703 = vmatprep.subr.bf16.mxu0 %v4488_v0 }
 0x16f   : > { %3705 = vmatpush3.bf16.msra.mxu0 %v3704_v38 }
 0x170   : > { %3706 = vmatprep.subr.bf16.mxu0 %v4488_v0 }
 0x173   : > { %3708 = vmatpush3.bf16.msra.mxu0 %v3707_v41 }
 0x174   : > { %3709 = vmatprep.subr.bf16.mxu0 %v4488_v0 }
 0x177   : > { %3711 = vmatpush3.bf16.msra.mxu0 %v3710_v44 }
 0x178   : > { %3712 = vmatprep.subr.bf16.mxu0 %v4488_v0 }
 0x17b   : > { %3714 = vmatpush3.bf16.msra.mxu0 %v3713_v47 }
 0x216   : > { %v930_v48 = vpop.f32.mrb[0].mxu1 }
 0x217   : > { %v3347_v49 = vpop.f32.mrb[1].mxu1  ;;  %v931_v17 = vadd.f32 %v930_v48, %v789_v13 }
 0x231   : > { %v1064_v61 = vpop.f32.mrb[0].mxu0 }
 0x232   : > { %v3908_v63 = vadd.f32 %v3907_v60, %v1064_v61  ;;  %v1066_v2 = vpop.f32.mrb[1].mxu0  ;;  %v714_v61 = vld [vmem:[%s4905_s13 + $0x40] sm:$0xff] }
 0x233   : > { %v3910_v4 = vadd.f32 %v3909_v62, %v1066_v2 }
 0x234   : > { %v3128_v3 = vmul.f32 -1.442695, %v3908_v63  ;;  %v715_v63 = vld [vmem:[%s4905_s13 + $0x48] sm:$0xff] }
 0x235   : > { %v3129_v5 = vmul.f32 -1.442695, %v3910_v4 }
 0x236   : > { %4055 = vpow2.f32 %v3128_v3  ;;  %v1135_v6 = vpop.f32.mrb[2].mxu1 }
 0x237   : > { %v3382_v7 = vpop.f32.mrb[3].mxu1  ;;  %4057 = vpow2.f32 %v3129_v5  ;;  %v1136_v15 = vadd.f32 %v1135_v6, %v994_v11  ;;  %v712_v5 = vld [vmem:[%s4905_s13 + $0x30] sm:$0xff] }
 0x238   : > { %v5030_v7 = vld [vmem:[%s5382_s16] ss:$0 sm:$0xff]  ;;  %s4348_s16 = sshll.u32 %s4492_s27, 4  ;;  %s4349_s16 = int_to_ptr.vmem [resolvable:$false] %s4348_s16 }
 0x239   : > { %p4351_p6 = scmp.lt.s32.totalorder %s2861_s5, %s4349_s16 }
 0x240   : > { %v4056_v8 = vpop.eup %4055 }
 0x241   : > { %v1144_v9 = vadd.f32 1.0, %v4056_v8  ;;  %v4058_v12 = vpop.eup %4057  ;;  %v713_v8 = vld [vmem:[%s4905_s13 + $0x38] sm:$0xff] }
 0x242   : > { %v1150_v14 = vadd.f32 1.0, %v4058_v12 }
 0x243   : > { %4059 = vrcp.f32 %v1144_v9 }
 0x244   : > { %4061 = vrcp.f32 %v1150_v14 }
 0x24d   : > { %v4060_v16 = vpop.eup %4059 }
 0x24e   : > { %v1153_v18 = vmul.f32 %v4060_v16, %v1136_v15  ;;  %v4062_v21 = vpop.eup %4061  ;;  %v716_v15 = vld [vmem:[%s4905_s13 + $0x50] sm:$0xff] }
 0x24f   : > { %v1156_v22 = vsub.f32 1.0, %v4062_v21  ;;  %v1158_v25 = vmul.f32 %v4062_v21, %v4956_v19 }
 0x250   : > { %v1154_v20 = vadd.f32 %v1153_v18, %v931_v17 }
 0x252   : > { %4063 = vtanh.f32 %v1154_v20  ;;  %v717_v20 = vld [vmem:[%s4905_s13 + $0x58] sm:$0xff] }
 0x25c   : > { %v4064_v23 = vpop.eup %4063 }
 0x25d   : > { %v1157_v24 = vmul.f32 %v4064_v23, %v1156_v22 }
 0x25f   : > { %v5000_v26 = vadd.f32 %v1158_v25, %v1157_v24 }
 0x261   : > { %3416 = vmatmul.mubr.f32.vlgmr.msra.gmra.mrb[2].mxu0 %v5000_v26 }
 0x262   : > { %2324 = vmatprep.mubr.f32.mxu0 %v4489_v1 }
 0x334   : > { %v1242_v31 = vpop.f32.mrb[2].mxu0 }
 0x335   : > { %v1254_v32 = vrot.slane %v1242_v31, %v5005_v30  ;;  %v3417_v33 = vpop.f32.mrb[3].mxu0  ;;  %v1247_v19 = vcombine.high %v1242_v31, %v1242_v31 }
 0x337   : > { %v1262_v34 = vcombine.high %v1254_v32, %v1254_v32  ;;  %v1270_v35 = vrot.slane %v1254_v32, %v5005_v30  ;;  %v1261_v40 = vrot.slane %v1247_v19, %v5005_v30  ;;  %v719_v32 = vld [vmem:[%s4905_s13 + $0x68] sm:$0xff] }
 0x339   : > { %v1284_v36 = vrot.slane %v1262_v34, %v5005_v30  ;;  %v1299_v38 = vrot.slane %v1270_v35, %v4979_v52  ;;  %v1292_v41 = vcombine.high %v1270_v35, %v1270_v35  ;;  %v1277_v47 = vrot.slane %v1261_v40, %v5005_v30 }
 0x33a   : > { %v1263_v57 = vcombine.high %v1261_v40, %v1261_v40 }
 0x33b   : > { %v1303_v42 = vrot.slane %v1284_v36, %v4979_v52  ;;  %v1336_v44 = vadd.f32 %v1299_v38, %v706_v37  ;;  %v1337_v46 = vadd.f32 %v1299_v38, %v707_v39  ;;  %v1307_v48 = vrot.slane %v1292_v41, %v4979_v52  ;;  %v720_v37 = vld [vmem:[%s4905_s13 + $0x70] sm:$0xff]  ;;  %v721_v41 = vld [vmem:[%s4905_s13 + $0x78] sm:$0xff] }
 0x33c   : > { %v1294_v58 = vcombine.high %v1284_v36, %v1284_v36  ;;  %v1315_v59 = vrot.slane %v1277_v47, %v4979_v52  ;;  %v1291_v2 = vrot.slane %v1263_v57, %v5005_v30  ;;  %v1293_v11 = vcombine.high %v1277_v47, %v1277_v47 }
 0x33d   : > { %v1338_v49 = vadd.f32 %v1303_v42, %v708_v43  ;;  %v1339_v54 = vadd.f32 %v1303_v42, %v709_v45  ;;  %4065 = vtanh.f32 %v1336_v44  ;;  %v1340_v60 = vadd.f32 %v1307_v48, %v710_v53 }
 0x33e   : > { %4067 = vtanh.f32 %v1337_v46  ;;  %v1341_v62 = vadd.f32 %v1307_v48, %v711_v56  ;;  %v1311_v3 = vrot.slane %v1294_v58, %v4979_v52  ;;  %v1344_v4 = vadd.f32 %v1315_v59, %v714_v61 }
 0x33f   : > { %4069 = vtanh.f32 %v1338_v49  ;;  %v1345_v6 = vadd.f32 %v1315_v59, %v715_v63  ;;  %v1319_v12 = vrot.slane %v1291_v2, %v4979_v52  ;;  %v1295_v23 = vcombine.high %v1291_v2, %v1291_v2 }
 0x340   : > { %4071 = vtanh.f32 %v1339_v54  ;;  %v1342_v13 = vadd.f32 %v1311_v3, %v712_v5  ;;  %v1343_v18 = vadd.f32 %v1311_v3, %v713_v8  ;;  %v1323_v24 = vrot.slane %v1293_v11, %v4979_v52 }
 0x341   : > { %4073 = vtanh.f32 %v1340_v60  ;;  %v1346_v25 = vadd.f32 %v1319_v12, %v716_v15  ;;  %v1347_v31 = vadd.f32 %v1319_v12, %v717_v20  ;;  %v1327_v34 = vrot.slane %v1295_v23, %v4979_v52 }
 0x342   : > { %4075 = vtanh.f32 %v1341_v62  ;;  %v1348_v35 = vadd.f32 %v1323_v24, %v718_v27  ;;  %v1349_v39 = vadd.f32 %v1323_v24, %v719_v32 }
 0x343   : > { %4077 = vtanh.f32 %v1344_v4  ;;  %v1350_v43 = vadd.f32 %v1327_v34, %v720_v37  ;;  %v1351_v46 = vadd.f32 %v1327_v34, %v721_v41 }
 0x344   : > { %4079 = vtanh.f32 %v1345_v6 }
 0x345   : > { %4081 = vtanh.f32 %v1342_v13  ;;  %v1441_v13 = vand.u32 127, %v778_v50 }
 0x346   : > { %4083 = vtanh.f32 %v1343_v18 }
 0x347   : > { %v4066_v9 = vpop.eup %4065  ;;  %4085 = vtanh.f32 %v1346_v25  ;;  %v1446_v15 = vadd.s32 4294967288, %v1441_v13 }
 0x348   : > { %v4068_v14 = vpop.eup %4067  ;;  %v1375_v16 = vmul.f32 %v4066_v9, %v5030_v7  ;;  %4087 = vtanh.f32 %v1347_v31 }
 0x349   : > { %v4070_v17 = vpop.eup %4069  ;;  %v1376_v28 = vmul.f32 %v4068_v14, %v5030_v7  ;;  %4089 = vtanh.f32 %v1348_v35  ;;  %v1449_v18 = vsub.s32 %v1446_v15, %v4976_v51 }
 0x34a   : > { %1391 = vadd.xlane.f32.xlu0 %v1375_v16  ;;  %v1377_v21 = vmul.f32 %v4070_v17, %v5030_v7  ;;  %v4072_v22 = vpop.eup %4071  ;;  %4091 = vtanh.f32 %v1349_v39 }
 0x34b   : > { %v4074_v29 = vpop.eup %4073  ;;  %v1378_v33 = vmul.f32 %v4072_v22, %v5030_v7  ;;  %4093 = vtanh.f32 %v1350_v43 }
 0x34c   : > { %1395 = vadd.xlane.f32.xlu1 %v1377_v21  ;;  %v4076_v19 = vpop.eup %4075  ;;  %v1379_v36 = vmul.f32 %v4074_v29, %v5030_v7  ;;  %4095 = vtanh.f32 %v1351_v46  ;;  %v1444_v21 = vsub.s32 %v1441_v13, %v4976_v51  ;;  %v2177_v13 = vld [vmem:[#allocation11 + $0x20] sm:$0xff] }
 0x34d   : > { %v4078_v38 = vpop.eup %4077  ;;  %v1380_v40 = vmul.f32 %v4076_v19, %v5030_v7 }
 0x34e   : > { %1393 = vadd.xlane.f32.xlu0 %v1376_v28  ;;  %v4080_v42 = vpop.eup %4079  ;;  %v1383_v44 = vmul.f32 %v4078_v38, %v5030_v7 }
 0x34f   : > { %v4082_v45 = vpop.eup %4081  ;;  %v1384_v47 = vmul.f32 %v4080_v42, %v5030_v7 }
 0x350   : > { %1397 = vadd.xlane.f32.xlu1 %v1378_v33  ;;  %v4084_v48 = vpop.eup %4083  ;;  %v1381_v49 = vmul.f32 %v4082_v45, %v5030_v7 }
 0x351   : > { %v4086_v53 = vpop.eup %4085  ;;  %v1382_v54 = vmul.f32 %v4084_v48, %v5030_v7 }
 0x352   : > { %1399 = vadd.xlane.f32.xlu0 %v1379_v36  ;;  %v4088_v56 = vpop.eup %4087  ;;  %v1385_v57 = vmul.f32 %v4086_v53, %v5030_v7 }
 0x353   : > { %v4090_v58 = vpop.eup %4089  ;;  %v1386_v59 = vmul.f32 %v4088_v56, %v5030_v7 }
 0x354   : > { %1401 = vadd.xlane.f32.xlu1 %v1380_v40  ;;  %v4092_v60 = vpop.eup %4091  ;;  %v1387_v61 = vmul.f32 %v4090_v58, %v5030_v7 }
 0x355   : > { %v4094_v62 = vpop.eup %4093  ;;  %v1388_v63 = vmul.f32 %v4092_v60, %v5030_v7 }
 0x356   : > { %1407 = vadd.xlane.f32.xlu0 %v1383_v44  ;;  %v4096_v2 = vpop.eup %4095  ;;  %v1389_v3 = vmul.f32 %v4094_v62, %v5030_v7 }
 0x357   : > { %v1390_v4 = vmul.f32 %v4096_v2, %v5030_v7 }
 0x358   : > { %1409 = vadd.xlane.f32.xlu1 %v1384_v47  ;;  %v689_v47 = vld [vmem:[%s678_s15] sm:$0xff] }
 0x359   : > { %vm1423_vm9 = vcmp.gt.f32.partialorder %v689_v47, 0.0 }
 0x35a   : > { %1403 = vadd.xlane.f32.xlu0 %v1381_v49 }
 0x35c   : > { %1405 = vadd.xlane.f32.xlu1 %v1382_v54 }
 0x35e   : > { %1411 = vadd.xlane.f32.xlu0 %v1385_v57 }
 0x360   : > { %1413 = vadd.xlane.f32.xlu1 %v1386_v59 }
 0x362   : > { %1415 = vadd.xlane.f32.xlu0 %v1387_v61 }
 0x364   : > { %1417 = vadd.xlane.f32.xlu1 %v1388_v63 }
 0x366   : > { %1419 = vadd.xlane.f32.xlu0 %v1389_v3 }
 0x368   : > { %1421 = vadd.xlane.f32.xlu1 %v1390_v4 }
 0x3d7   : > { %v1392_v5 = vpop.xlane.xlu0 %1391 }
 0x3d8   : > { %v1445_v50 = vrot.slane %v1392_v5, %v1444_v21 }
 0x3d9   : > { %v1396_v6 = vpop.xlane.xlu1 %1395 }
 0x3da   : > { %v1456_v24 = vrot.slane %v1396_v6, %v1444_v21 }
 0x3db   : > { %v1394_v8 = vpop.xlane.xlu0 %1393 }
 0x3dc   : > { %v1450_v25 = vrot.slane %v1394_v8, %v1449_v18  ;;  %v690_v8 = vld [vmem:[%s4899_s7] sm:$0xff] }
 0x3dd   : > { %v1398_v9 = vpop.xlane.xlu1 %1397 }
 0x3de   : > { %v1460_v22 = vrot.slane %v1398_v9, %v1449_v18  ;;  %v1452_v51 = vsel %vm1451_vm1, %v1450_v25, %v1445_v50  ;;  %v691_v9 = vld [vmem:[%s4899_s7 + $0x8] sm:$0xff] }
 0x3df   : > { %v1400_v11 = vpop.xlane.xlu0 %1399 }
 0x3e0   : > { %v1465_v28 = vrot.slane %v1400_v11, %v1444_v21  ;;  %v1461_v31 = vsel %vm1451_vm1, %v1460_v22, %v1456_v24  ;;  %v3716_v11 = vpack.c.bf16 %v691_v9, %v690_v8  ;;  %v692_v22 = vld [vmem:[%s4899_s7 + $0x10] sm:$0xff]  ;;  %v2184_v9 = vld [vmem:[#allocation11 + $0x58] sm:$0xff] }
 0x3e1   : > { %v1402_v12 = vpop.xlane.xlu1 %1401  ;;  %v1517_v36 = vsel %vm1516_vm2, %v1461_v31, %v1452_v51 }
 0x3e2   : > { %v1469_v7 = vrot.slane %v1402_v12, %v1449_v18  ;;  %3717 = vmatpush3.bf16.msra.mxu1 %v3716_v11  ;;  %v2174_v12 = vld [vmem:[#allocation11 + $0x8] sm:$0xff] }
 0x3e3   : > { %v1408_v14 = vpop.xlane.xlu0 %1407  ;;  %3718 = vmatprep.subr.bf16.mxu1 %v4488_v0  ;;  %v2186_v11 = vld [vmem:[#allocation11 + $0x68] sm:$0xff] }
 0x3e4   : > { %v1470_v33 = vsel %vm1451_vm1, %v1469_v7, %v1465_v28  ;;  %v1483_v42 = vrot.slane %v1408_v14, %v1444_v21  ;;  %v3739_v14 = vpack.c.bf16 %v2177_v13, %v2174_v12  ;;  %v693_v7 = vld [vmem:[%s4899_s7 + $0x18] sm:$0xff]  ;;  %v694_v28 = vld [vmem:[%s4899_s7 + $0x20] sm:$0xff] }
 0x3e5   : > { %v1410_v16 = vpop.xlane.xlu1 %1409  ;;  %v1519_v39 = vsel %vm1518_vm3, %v1470_v33, %v1517_v36  ;;  %v3719_v24 = vpack.c.bf16 %v693_v7, %v692_v22  ;;  %v697_v33 = vld [vmem:[%s4899_s7 + $0x38] sm:$0xff]  ;;  %v699_v36 = vld [vmem:[%s4899_s7 + $0x48] sm:$0xff]  ;;  %v2189_v12 = vld [vmem:[#allocation11 + $0x80] sm:$0xff] }
 0x3e6   : > { %v1487_v37 = vrot.slane %v1410_v16, %v1449_v18  ;;  %3740 = vmatprep.subr.bf16.mxu0 %v3739_v14  ;;  %v3747_v14 = vpack.c.bf16 %v2189_v12, %v2186_v11  ;;  %v2195_v22 = vld [vmem:[#allocation11 + $0xb0] sm:$0xff] }
 0x3e7   : > { %v1404_v17 = vpop.xlane.xlu0 %1403 }
 0x3e8   : > { %v1474_v32 = vrot.slane %v1404_v17, %v1444_v21  ;;  %v1488_v48 = vsel %vm1451_vm1, %v1487_v37, %v1483_v42 }
 0x3e9   : > { %v1406_v20 = vpop.xlane.xlu1 %1405 }
 0x3ea   : > { %v1478_v27 = vrot.slane %v1406_v20, %v1449_v18 }
 0x3eb   : > { %v1412_v23 = vpop.xlane.xlu0 %1411 }
 0x3ec   : > { %v1479_v34 = vsel %vm1451_vm1, %v1478_v27, %v1474_v32  ;;  %v1492_v40 = vrot.slane %v1412_v23, %v1444_v21  ;;  %v696_v32 = vld [vmem:[%s4899_s7 + $0x30] sm:$0xff] }
 0x3ed   : > { %v1414_v29 = vpop.xlane.xlu1 %1413  ;;  %v1521_v43 = vsel %vm1520_vm4, %v1479_v34, %v1519_v39 }
 0x3ee   : > { %v1496_v35 = vrot.slane %v1414_v29, %v1449_v18  ;;  %v1523_v57 = vsel %vm1522_vm5, %v1488_v48, %v1521_v43  ;;  %v695_v29 = vld [vmem:[%s4899_s7 + $0x28] sm:$0xff] }
 0x3ef   : > { %v1416_v19 = vpop.xlane.xlu0 %1415  ;;  %v3722_v50 = vpack.c.bf16 %v695_v29, %v694_v28  ;;  %v2196_v29 = vld [vmem:[#allocation11 + $0xb8] sm:$0xff] }
 0x3f0   : > { %v1501_v44 = vrot.slane %v1416_v19, %v1444_v21  ;;  %v1497_v46 = vsel %vm1451_vm1, %v1496_v35, %v1492_v40  ;;  %v3725_v19 = vpack.c.bf16 %v697_v33, %v696_v32  ;;  %v698_v35 = vld [vmem:[%s4899_s7 + $0x40] sm:$0xff]  ;;  %v700_v40 = vld [vmem:[%s4899_s7 + $0x50] sm:$0xff] }
 0x3f1   : > { %v1418_v38 = vpop.xlane.xlu1 %1417  ;;  %v1525_v58 = vsel %vm1524_vm6, %v1497_v46, %v1523_v57  ;;  %v3728_v37 = vpack.c.bf16 %v699_v36, %v698_v35  ;;  %v703_v46 = vld [vmem:[%s4899_s7 + $0x68] sm:$0xff] }
 0x3f2   : > { %v1505_v41 = vrot.slane %v1418_v38, %v1449_v18  ;;  %v2202_v36 = vld [vmem:[#allocation11 + $0xe8] sm:$0xff] }
 0x3f3   : > { %v1420_v45 = vpop.xlane.xlu0 %1419 }
 0x3f4   : > { %v1506_v49 = vsel %vm1451_vm1, %v1505_v41, %v1501_v44  ;;  %v1510_v54 = vrot.slane %v1420_v45, %v1444_v21  ;;  %v701_v41 = vld [vmem:[%s4899_s7 + $0x58] sm:$0xff]  ;;  %v702_v45 = vld [vmem:[%s4899_s7 + $0x60] sm:$0xff] }
 0x3f5   : > { %v1422_v53 = vpop.xlane.xlu1 %1421  ;;  %v1527_v60 = vsel %vm1526_vm7, %v1506_v49, %v1525_v58  ;;  %v3731_v42 = vpack.c.bf16 %v701_v41, %v700_v40  ;;  %v3734_v47 = vpack.c.bf16 %v703_v46, %v702_v45  ;;  %v704_v49 = vld [vmem:[%s4899_s7 + $0x70] sm:$0xff]  ;;  %v2176_v58 = vld [vmem:[#allocation11 + $0x18] sm:$0xff]  ;;  %v2210_v46 = vld [vmem:[#allocation11 + $0x128] sm:$0xff] }
 0x3f6   : > { %v1514_v56 = vrot.slane %v1422_v53, %v1449_v18  ;;  %v705_v53 = vld [vmem:[%s4899_s7 + $0x78] sm:$0xff]  ;;  %v2203_v41 = vld [vmem:[#allocation11 + $0xf0] sm:$0xff] }
 0x3f7   : > { %v2208_v45 = vld [vmem:[#allocation11 + $0x118] sm:$0xff] }
 0x3f8   : > { %v1515_v59 = vsel %vm1451_vm1, %v1514_v56, %v1510_v54  ;;  %v3737_v54 = vpack.c.bf16 %v705_v53, %v704_v49  ;;  %v2209_v53 = vld [vmem:[#allocation11 + $0x120] sm:$0xff] }
 0x3f9   : > { %v1529_v61 = vsel %vm1528_vm8, %v1515_v59, %v1527_v60  ;;  %v2175_v59 = vld [vmem:[#allocation11 + $0x10] sm:$0xff] }
 0x3fa   : > { %v1531_v62 = vsel %vm1423_vm9, %v1529_v61, -1e+30  ;;  %v2178_v61 = vld [vmem:[#allocation11 + $0x28] sm:$0xff] }
 0x3fb   : > { %v1533_v63 = vsel %vm1532_vm10, %v1531_v62, -inf }
 0x3fc   : > { %1534 = vmax.xlane.f32.xlu0 %v1533_v63  ;;  %v2183_v63 = vld [vmem:[#allocation11 + $0x50] sm:$0xff] }
 0x489   : > { %v1535_v2 = vpop.xlane.xlu0 %1534 }
 0x48a   : > { %v1536_v3 = vsub.f32 %v1531_v62, %v1535_v2  ;;  %v2180_v62 = vld [vmem:[#allocation11 + $0x38] sm:$0xff]  ;;  %v3772_v2 = vpack.c.bf16 %v2178_v61, %v2175_v59  ;;  %v2219_v59 = vld [vmem:[#allocation11 + $0x170] sm:$0xff] }
 0x48c   : > { %v1537_v4 = vmul.f32 1.442695, %v1536_v3  ;;  %v3743_v3 = vpack.c.bf16 %v2183_v63, %v2180_v62  ;;  %v2215_v62 = vld [vmem:[#allocation11 + $0x150] sm:$0xff]  ;;  %v2218_v63 = vld [vmem:[#allocation11 + $0x168] sm:$0xff] }
 0x48e   : > { %4097 = vpow2.f32 %v1537_v4  ;;  %v2179_v4 = vld [vmem:[#allocation11 + $0x30] sm:$0xff] }
 0x498   : > { %v4098_v5 = vpop.eup %4097 }
 0x499   : > { %v1539_v6 = vsel %vm1532_vm10, %v4098_v5, 0.0 }
 0x49a   : > { %1540 = vadd.xlane.f32.xlu1 %v1539_v6  ;;  %v2181_v6 = vld [vmem:[#allocation11 + $0x40] sm:$0xff] }
 0x49b   : > { %v3775_v13 = vpack.c.bf16 %v2184_v9, %v2181_v6  ;;  %v2405_v6 = vld [vmem:[#allocation11 + $0x1a0] sm:$0xff] }
 0x527   : > { %v1541_v15 = vpop.xlane.xlu1 %1540 }
 0x528   : > { %4099 = vrcp.f32 %v1541_v15 }
 0x532   : > { %v4100_v16 = vpop.eup %4099 }
 0x533   : > { %v1543_v17 = vmul.f32 %v4100_v16, %v1541_v15  ;;  %v2185_v15 = vld [vmem:[#allocation11 + $0x60] sm:$0xff] }
 0x535   : > { %v1544_v18 = vsub.f32 2.0, %v1543_v17  ;;  %v2187_v17 = vld [vmem:[#allocation11 + $0x70] sm:$0xff] }
 0x537   : > { %v1545_v20 = vmul.f32 %v4100_v16, %v1544_v18  ;;  %v2188_v16 = vld [vmem:[#allocation11 + $0x78] sm:$0xff] }
 0x538   : > { %v3749_v18 = vpack.c.bf16 %v2188_v16, %v2185_v15 }
 0x539   : > { %v1546_v21 = vmul.f32 %v4098_v5, %v1545_v20  ;;  %v2182_v5 = vld [vmem:[#allocation11 + $0x48] sm:$0xff] }
 0x53a   : > { %v3745_v8 = vpack.c.bf16 %v2182_v5, %v2179_v4  ;;  %v2190_v20 = vld [vmem:[#allocation11 + $0x88] sm:$0xff]  ;;  %v2220_v4 = vld [vmem:[#allocation11 + $0x178] sm:$0xff] }
 0x53b   : > { %v1555_v23 = vrot.slane %v1546_v21, %v5005_v30  ;;  %v1548_v51 = vcombine.high %v1546_v21, %v1546_v21  ;;  %v2192_v21 = vld [vmem:[#allocation11 + $0x98] sm:$0xff]  ;;  %v3778_v7 = vpack.c.bf16 %v2190_v20, %v2187_v17  ;;  %v2402_v5 = vld [vmem:[#allocation11 + $0x188] sm:$0xff] }
 0x53c   : > { %v3795_v9 = vpack.c.bf16 %v2405_v6, %v2402_v5 }
 0x53d   : > { %v1563_v25 = vcombine.high %v1555_v23, %v1555_v23  ;;  %v1571_v27 = vrot.slane %v1555_v23, %v5005_v30  ;;  %v1562_v38 = vrot.slane %v1548_v51, %v5005_v30  ;;  %v3751_v23 = vpack.c.bf16 %v2195_v22, %v2192_v21  ;;  %v2200_v51 = vld [vmem:[#allocation11 + $0xd8] sm:$0xff] }
 0x53f   : > { %3423 = vmatmul.mubr.msk.f32.vlgmr.msra.gmra.mrb[4].mxu1 %vm1532_vm10, %v1571_v27  ;;  %v1585_v31 = vrot.slane %v1563_v25, %v5005_v30  ;;  %v1593_v34 = vcombine.high %v1571_v27, %v1571_v27  ;;  %v1564_v43 = vcombine.high %v1562_v38, %v1562_v38  ;;  %v1578_v44 = vrot.slane %v1562_v38, %v5005_v30  ;;  %v2194_v25 = vld [vmem:[#allocation11 + $0xa8] sm:$0xff]  ;;  %v2193_v27 = vld [vmem:[#allocation11 + $0xa0] sm:$0xff]  ;;  %v2207_v38 = vld [vmem:[#allocation11 + $0x110] sm:$0xff] }
 0x540   : > { %3720 = vmatpush3.bf16.msra.mxu1 %v3719_v24  ;;  %3429 = vmatprep.mubr.msk.f32.mxu1 %vm4490_vm0, %v4489_v1  ;;  %v2191_v24 = vld [vmem:[#allocation11 + $0x90] sm:$0xff]  ;;  %v3781_v32 = vpack.c.bf16 %v2196_v29, %v2193_v27 }
 0x541   : > { %3721 = vmatprep.subr.bf16.mxu1 %v4488_v0  ;;  %v1595_v39 = vcombine.high %v1585_v31, %v1585_v31  ;;  %v1592_v48 = vrot.slane %v1564_v43, %v5005_v30  ;;  %v1594_v56 = vcombine.high %v1578_v44, %v1578_v44  ;;  %v2173_v30 = vld [vmem:[#allocation11] sm:$0xff]  ;;  %v3753_v28 = vpack.c.bf16 %v2194_v25, %v2191_v24 }
 0x542   : > { %v3741_v60 = vpack.c.bf16 %v2176_v58, %v2173_v30  ;;  %v2205_v43 = vld [vmem:[#allocation11 + $0x100] sm:$0xff]  ;;  %v2214_v30 = vld [vmem:[#allocation11 + $0x148] sm:$0xff]  ;;  %v2216_v58 = vld [vmem:[#allocation11 + $0x158] sm:$0xff] }
 0x543   : > { %3430 = vmatmul.mubr.msk.f32.vlgmr.msra.gmra.mrb[6].mxu1 %vm1532_vm10, %v1585_v31  ;;  %v1596_v57 = vcombine.high %v1592_v48, %v1592_v48  ;;  %v2201_v31 = vld [vmem:[#allocation11 + $0xe0] sm:$0xff]  ;;  %v3767_v61 = vpack.c.bf16 %v2219_v59, %v2216_v58 }
 0x544   : > { %3723 = vmatpush3.bf16.msra.mxu1 %v3722_v50  ;;  %3436 = vmatprep.mubr.msk.f32.mxu1 %vm4490_vm0, %v4489_v1  ;;  %v2198_v50 = vld [vmem:[#allocation11 + $0xc8] sm:$0xff] }
 0x545   : > { %3724 = vmatprep.subr.bf16.mxu1 %v4488_v0  ;;  %3742 = vmatpush1.bf16.msra.mxu0 %v3741_v60  ;;  %v3755_v33 = vpack.c.bf16 %v2201_v31, %v2198_v50 }
 0x546   : > { %3744 = vmatprep.subr.bf16.mxu0 %v3743_v3  ;;  %v3769_v3 = vpack.c.bf16 %v2218_v63, %v2215_v62  ;;  %v2416_v62 = vld [vmem:[#allocation11 + $0x1f8] sm:$0xff]  ;;  %v2415_v63 = vld [vmem:[#allocation11 + $0x1f0] sm:$0xff] }
 0x547   : > { %3437 = vmatmul.mubr.msk.f32.vlgmr.msra.gmra.mrb[8].mxu1 %vm1532_vm10, %v1593_v34  ;;  %v2199_v34 = vld [vmem:[#allocation11 + $0xd0] sm:$0xff] }
 0x548   : > { %3726 = vmatpush3.bf16.msra.mxu1 %v3725_v19  ;;  %3443 = vmatprep.mubr.msk.f32.mxu1 %vm4490_vm0, %v4489_v1  ;;  %v2197_v19 = vld [vmem:[#allocation11 + $0xc0] sm:$0xff] }
 0x549   : > { %3727 = vmatprep.subr.bf16.mxu1 %v4488_v0  ;;  %3746 = vmatpush1.bf16.msra.mxu0 %v3745_v8  ;;  %v3757_v35 = vpack.c.bf16 %v2200_v51, %v2197_v19 }
 0x54a   : > { %3748 = vmatprep.subr.bf16.mxu0 %v3747_v14 }
 0x54b   : > { %3444 = vmatmul.mubr.msk.f32.vlgmr.msra.gmra.mrb[10].mxu1 %vm1532_vm10, %v1595_v39  ;;  %v3784_v39 = vpack.c.bf16 %v2202_v36, %v2199_v34  ;;  %v2404_v36 = vld [vmem:[#allocation11 + $0x198] sm:$0xff] }
 0x54c   : > { %3729 = vmatpush3.bf16.msra.mxu1 %v3728_v37  ;;  %3450 = vmatprep.mubr.msk.f32.mxu1 %vm4490_vm0, %v4489_v1  ;;  %v2204_v37 = vld [vmem:[#allocation11 + $0xf8] sm:$0xff] }
 0x54d   : > { %3730 = vmatprep.subr.bf16.mxu1 %v4488_v0  ;;  %3750 = vmatpush1.bf16.msra.mxu0 %v3749_v18  ;;  %v3759_v40 = vpack.c.bf16 %v2207_v38, %v2204_v37  ;;  %v2403_v37 = vld [vmem:[#allocation11 + $0x190] sm:$0xff]  ;;  %v2406_v38 = vld [vmem:[#allocation11 + $0x1a8] sm:$0xff] }
 0x54e   : > { %3752 = vmatprep.subr.bf16.mxu0 %v3751_v23 }
 0x54f   : > { %3451 = vmatmul.mubr.msk.f32.vlgmr.msra.gmra.mrb[12].mxu1 %vm1532_vm10, %v1578_v44 }
 0x550   : > { %3732 = vmatpush3.bf16.msra.mxu1 %v3731_v42  ;;  %3457 = vmatprep.mubr.msk.f32.mxu1 %vm4490_vm0, %v4489_v1  ;;  %v2206_v42 = vld [vmem:[#allocation11 + $0x108] sm:$0xff] }
 0x551   : > { %3733 = vmatprep.subr.bf16.mxu1 %v4488_v0  ;;  %3754 = vmatpush1.bf16.msra.mxu0 %v3753_v28  ;;  %v3761_v44 = vpack.c.bf16 %v2206_v42, %v2203_v41  ;;  %v2411_v41 = vld [vmem:[#allocation11 + $0x1d0] sm:$0xff] }
 0x552   : > { %3756 = vmatprep.subr.bf16.mxu0 %v3755_v33 }
 0x553   : > { %3458 = vmatmul.mubr.msk.f32.vlgmr.msra.gmra.mrb[14].mxu1 %vm1532_vm10, %v1592_v48  ;;  %v3787_v48 = vpack.c.bf16 %v2208_v45, %v2205_v43 }
 0x554   : > { %3735 = vmatpush3.bf16.msra.mxu1 %v3734_v47  ;;  %3464 = vmatprep.mubr.msk.f32.mxu1 %vm4490_vm0, %v4489_v1  ;;  %v2213_v47 = vld [vmem:[#allocation11 + $0x140] sm:$0xff] }
 0x555   : > { %3736 = vmatprep.subr.bf16.mxu1 %v4488_v0  ;;  %3758 = vmatpush1.bf16.msra.mxu0 %v3757_v35  ;;  %v3763_v49 = vpack.c.bf16 %v2213_v47, %v2210_v46  ;;  %v2401_v35 = vld [vmem:[#allocation11 + $0x180] sm:$0xff]  ;;  %v3828_v46 = vpack.c.bf16 %v2406_v38, %v2403_v37  ;;  %v2407_v47 = vld [vmem:[#allocation11 + $0x1b0] sm:$0xff]  ;;  %v2440_v37 = vld [vmem:[#allocation11 + $0x2b8] sm:$0xff] }
 0x556   : > { %3760 = vmatprep.subr.bf16.mxu0 %v3759_v40  ;;  %v2408_v40 = vld [vmem:[#allocation11 + $0x1b8] sm:$0xff]  ;;  %v3797_v45 = vpack.c.bf16 %v2404_v36, %v2401_v35  ;;  %v2437_v35 = vld [vmem:[#allocation11 + $0x2a0] sm:$0xff]  ;;  %v2439_v38 = vld [vmem:[#allocation11 + $0x2b0] sm:$0xff] }
 0x557   : > { %3465 = vmatmul.mubr.msk.f32.vlgmr.msra.gmra.mrb[16].mxu1 %vm1532_vm10, %v1594_v56  ;;  %v2211_v56 = vld [vmem:[#allocation11 + $0x130] sm:$0xff] }
 0x558   : > { %3738 = vmatpush3.bf16.msra.mxu1 %v3737_v54  ;;  %3471 = vmatprep.mubr.msk.f32.mxu1 %vm4490_vm0, %v4489_v1  ;;  %v2212_v54 = vld [vmem:[#allocation11 + $0x138] sm:$0xff]  ;;  %v3790_v60 = vpack.c.bf16 %v2214_v30, %v2211_v56  ;;  %v2417_v30 = vld [vmem:[#allocation11 + $0x200] sm:$0xff] }
 0x559   : > { %3771 = vmatprep.subr.bf16.mxu1 %v4488_v0  ;;  %3762 = vmatpush1.bf16.msra.mxu0 %v3761_v44 }
 0x55a   : > { %3764 = vmatprep.subr.bf16.mxu0 %v3763_v49  ;;  %v2410_v49 = vld [vmem:[#allocation11 + $0x1c8] sm:$0xff] }
 0x55b   : > { %3472 = vmatmul.mubr.msk.f32.vlgmr.msra.gmra.mrb[18].mxu1 %vm1532_vm10, %v1596_v57  ;;  %v3765_v57 = vpack.c.bf16 %v2212_v54, %v2209_v53  ;;  %v2409_v53 = vld [vmem:[#allocation11 + $0x1c0] sm:$0xff]  ;;  %v2412_v54 = vld [vmem:[#allocation11 + $0x1d8] sm:$0xff]  ;;  %v3801_v58 = vpack.c.bf16 %v2410_v49, %v2407_v47 }
 0x55c   : > { %3506 = vmatprep.mubr.msk.f32.mxu1 %vm4490_vm0, %v4489_v1  ;;  %3773 = vmatpush3.bf16.msra.mxu1 %v3772_v2  ;;  %v2217_v2 = vld [vmem:[#allocation11 + $0x160] sm:$0xff]  ;;  %v3831_v59 = vpack.c.bf16 %v2412_v54, %v2409_v53 }
 0x55d   : > { %3774 = vmatprep.subr.bf16.mxu1 %v4488_v0  ;;  %3766 = vmatpush1.bf16.msra.mxu0 %v3765_v57  ;;  %v3793_v8 = vpack.c.bf16 %v2220_v4, %v2217_v2  ;;  %v2414_v57 = vld [vmem:[#allocation11 + $0x1e8] sm:$0xff]  ;;  %v2423_v4 = vld [vmem:[#allocation11 + $0x230] sm:$0xff]  ;;  %v2445_v47 = vld [vmem:[#allocation11 + $0x2e0] sm:$0xff] }
 0x55e   : > { %3768 = vmatprep.subr.bf16.mxu0 %v3767_v61  ;;  %v3803_v61 = vpack.c.bf16 %v2417_v30, %v2414_v57  ;;  %v2418_v2 = vld [vmem:[#allocation11 + $0x208] sm:$0xff]  ;;  %v2659_v54 = vld [vmem:[#allocation14 + $0x100] sm:$0xff] }
 0x55f   : > { %v3834_v6 = vpack.c.bf16 %v2418_v2, %v2415_v63  ;;  %v2660_v57 = vld [vmem:[#allocation14 + $0x108] sm:$0xff]  ;;  %v2665_v2 = vld [vmem:[#allocation14 + $0x130] sm:$0xff] }
 0x560   : > { %3776 = vmatpush3.bf16.msra.mxu1 %v3775_v13  ;;  %v3884_v30 = vpack.c.bf16 %v2660_v57, %v2659_v54  ;;  %v2656_v54 = vld [vmem:[#allocation14 + $0xe8] sm:$0xff] }
 0x561   : > { %3777 = vmatprep.subr.bf16.mxu1 %v4488_v0  ;;  %3770 = vmatpush1.bf16.msra.mxu0 %v3769_v3  ;;  %v2420_v3 = vld [vmem:[#allocation11 + $0x218] sm:$0xff] }
 0x562   : > { %3796 = vmatprep.subr.bf16.mxu0 %v3795_v9  ;;  %v3807_v9 = vpack.c.bf16 %v2423_v4, %v2420_v3  ;;  %v2666_v3 = vld [vmem:[#allocation14 + $0x138] sm:$0xff] }
 0x563   : > { %v3893_v4 = vpack.c.bf16 %v2666_v3, %v2665_v2  ;;  %v2641_v2 = vld [vmem:[#allocation14 + $0x70] sm:$0xff]  ;;  %v2642_v3 = vld [vmem:[#allocation14 + $0x78] sm:$0xff] }
 0x564   : > { %3779 = vmatpush3.bf16.msra.mxu1 %v3778_v7 }
 0x565   : > { %3780 = vmatprep.subr.bf16.mxu1 %v4488_v0 }
 0x568   : > { %3782 = vmatpush3.bf16.msra.mxu1 %v3781_v32 }
 0x569   : > { %3783 = vmatprep.subr.bf16.mxu1 %v4488_v0 }
 0x56c   : > { %3785 = vmatpush3.bf16.msra.mxu1 %v3784_v39 }
 0x56d   : > { %3786 = vmatprep.subr.bf16.mxu1 %v4488_v0 }
 0x570   : > { %3788 = vmatpush3.bf16.msra.mxu1 %v3787_v48  ;;  %v3799_v48 = vpack.c.bf16 %v2411_v41, %v2408_v40  ;;  %v2444_v40 = vld [vmem:[#allocation11 + $0x2d8] sm:$0xff]  ;;  %v2447_v41 = vld [vmem:[#allocation11 + $0x2f0] sm:$0xff] }
 0x571   : > { %3789 = vmatprep.subr.bf16.mxu1 %v4488_v0 }
 0x574   : > { %3791 = vmatpush3.bf16.msra.mxu1 %v3790_v60  ;;  %v2413_v60 = vld [vmem:[#allocation11 + $0x1e0] sm:$0xff] }
 0x575   : > { %3792 = vmatprep.subr.bf16.mxu1 %v4488_v0  ;;  %v3805_v5 = vpack.c.bf16 %v2416_v62, %v2413_v60  ;;  %v2664_v62 = vld [vmem:[#allocation14 + $0x128] sm:$0xff] }
 0x578   : > { %3794 = vmatpush3.bf16.msra.mxu1 %v3793_v8  ;;  %v2419_v8 = vld [vmem:[#allocation11 + $0x210] sm:$0xff] }
 0x579   : > { %3827 = vmatprep.subr.bf16.mxu1 %v4488_v0 }
 0x612   : > { %v1665_v11 = vpop.f32.mrb[4].mxu1 }
 0x613   : > { %v3424_v12 = vpop.f32.mrb[5].mxu1 }
 0x614   : > { %v2421_v12 = vld [vmem:[#allocation11 + $0x220] sm:$0xff] }
 0x616   : > { %v1737_v13 = vpop.f32.mrb[6].mxu1 }
 0x617   : > { %v2245_v14 = vrot.slane %v1737_v13, 7  ;;  %v3431_v15 = vpop.f32.mrb[7].mxu1  ;;  %v2424_v13 = vld [vmem:[#allocation11 + $0x238] sm:$0xff] }
 0x618   : > { %v2429_v15 = vld [vmem:[#allocation11 + $0x260] sm:$0xff] }
 0x619   : > { %v2246_v16 = vsel %vm1516_vm2, %v2245_v14, %v1665_v11  ;;  %v2422_v11 = vld [vmem:[#allocation11 + $0x228] sm:$0xff] }
 0x61a   : > { %v1809_v17 = vpop.f32.mrb[8].mxu1  ;;  %v2426_v14 = vld [vmem:[#allocation11 + $0x248] sm:$0xff] }
 0x61b   : > { %v2247_v18 = vrot.slane %v1809_v17, 6  ;;  %v3438_v20 = vpop.f32.mrb[9].mxu1  ;;  %v3837_v17 = vpack.c.bf16 %v2424_v13, %v2421_v12  ;;  %v2671_v12 = vld [vmem:[#allocation14 + $0x160] sm:$0xff]  ;;  %v2672_v13 = vld [vmem:[#allocation14 + $0x168] sm:$0xff] }
 0x61c   : > { %v3811_v20 = vpack.c.bf16 %v2429_v15, %v2426_v14  ;;  %v3902_v14 = vpack.c.bf16 %v2672_v13, %v2671_v12  ;;  %v2673_v15 = vld [vmem:[#allocation14 + $0x170] sm:$0xff] }
 0x61d   : > { %v2248_v21 = vsel %vm1518_vm3, %v2247_v18, %v2246_v16  ;;  %v3809_v16 = vpack.c.bf16 %v2422_v11, %v2419_v8  ;;  %v2425_v18 = vld [vmem:[#allocation11 + $0x240] sm:$0xff] }
 0x61e   : > { %v1881_v22 = vpop.f32.mrb[10].mxu1 }
 0x61f   : > { %v2249_v7 = vrot.slane %v1881_v22, 5  ;;  %v3445_v23 = vpop.f32.mrb[11].mxu1  ;;  %v2427_v22 = vld [vmem:[#allocation11 + $0x250] sm:$0xff] }
 0x620   : > { %v2432_v23 = vld [vmem:[#allocation11 + $0x278] sm:$0xff] }
 0x621   : > { %v2250_v24 = vsel %vm1520_vm4, %v2249_v7, %v2248_v21  ;;  %v2428_v21 = vld [vmem:[#allocation11 + $0x258] sm:$0xff]  ;;  %v2430_v7 = vld [vmem:[#allocation11 + $0x268] sm:$0xff] }
 0x622   : > { %v1953_v25 = vpop.f32.mrb[12].mxu1 }
 0x623   : > { %v2251_v27 = vrot.slane %v1953_v25, 4  ;;  %v3452_v28 = vpop.f32.mrb[13].mxu1  ;;  %v3813_v25 = vpack.c.bf16 %v2428_v21, %v2425_v18  ;;  %v2643_v18 = vld [vmem:[#allocation14 + $0x80] sm:$0xff] }
 0x624   : > { %v2431_v28 = vld [vmem:[#allocation11 + $0x270] sm:$0xff] }
 0x625   : > { %v2252_v29 = vsel %vm1522_vm5, %v2251_v27, %v2250_v24  ;;  %v2435_v24 = vld [vmem:[#allocation11 + $0x290] sm:$0xff]  ;;  %v3840_v27 = vpack.c.bf16 %v2430_v7, %v2427_v22  ;;  %v2627_v22 = vld [vmem:[#allocation14] sm:$0xff]  ;;  %v2628_v7 = vld [vmem:[#allocation14 + $0x8] sm:$0xff] }
 0x626   : > { %v2025_v50 = vpop.f32.mrb[14].mxu1 }
 0x627   : > { %v2253_v31 = vrot.slane %v2025_v50, 3  ;;  %v3459_v32 = vpop.f32.mrb[15].mxu1  ;;  %v2434_v50 = vld [vmem:[#allocation11 + $0x288] sm:$0xff] }
 0x628   : > { %v2436_v32 = vld [vmem:[#allocation11 + $0x298] sm:$0xff] }
 0x629   : > { %v2254_v33 = vsel %vm1524_vm6, %v2253_v31, %v2252_v29  ;;  %v3815_v29 = vpack.c.bf16 %v2435_v24, %v2432_v23  ;;  %v2433_v31 = vld [vmem:[#allocation11 + $0x280] sm:$0xff]  ;;  %v3853_v23 = vpack.c.bf16 %v2628_v7, %v2627_v22  ;;  %v2645_v24 = vld [vmem:[#allocation14 + $0x90] sm:$0xff] }
 0x62a   : > { %v2097_v19 = vpop.f32.mrb[16].mxu1 }
 0x62b   : > { %v2255_v51 = vrot.slane %v2097_v19, 2  ;;  %v3466_v34 = vpop.f32.mrb[17].mxu1  ;;  %v2441_v19 = vld [vmem:[#allocation11 + $0x2c0] sm:$0xff] }
 0x62c   : > { %v3843_v34 = vpack.c.bf16 %v2436_v32, %v2433_v31  ;;  %v2648_v31 = vld [vmem:[#allocation14 + $0xa8] sm:$0xff] }
 0x62d   : > { %v2256_v39 = vsel %vm1526_vm7, %v2255_v51, %v2254_v33  ;;  %v2438_v33 = vld [vmem:[#allocation11 + $0x2a8] sm:$0xff]  ;;  %v3817_v51 = vpack.c.bf16 %v2434_v50, %v2431_v28  ;;  %v2629_v28 = vld [vmem:[#allocation14 + $0x10] sm:$0xff] }
 0x62e   : > { %v2169_v42 = vpop.f32.mrb[18].mxu1  ;;  %v3819_v36 = vpack.c.bf16 %v2441_v19, %v2438_v33  ;;  %v2632_v33 = vld [vmem:[#allocation14 + $0x28] sm:$0xff] }
 0x62f   : > { %v2257_v43 = vrot.slane %v2169_v42, 1  ;;  %v3473_v44 = vpop.f32.mrb[19].mxu1  ;;  %v3821_v42 = vpack.c.bf16 %v2440_v37, %v2437_v35  ;;  %v2633_v35 = vld [vmem:[#allocation14 + $0x30] sm:$0xff]  ;;  %v2634_v37 = vld [vmem:[#allocation14 + $0x38] sm:$0xff] }
 0x630   : > { %v2443_v44 = vld [vmem:[#allocation11 + $0x2d0] sm:$0xff] }
 0x631   : > { %v5152_v56 = vsel %vm1528_vm8, %v2257_v43, %v2256_v39  ;;  %v2442_v39 = vld [vmem:[#allocation11 + $0x2c8] sm:$0xff] }
 0x632   : > { %2325 = vmatmul.mubr.f32.vlgmr.msra.gmra.mrb[4].mxu0 %v5152_v56  ;;  %3507 = vmatmul.mubr.f32.vlgmr.msra.gmra.mrb[20].mxu1 %v5152_v56  ;;  %v3846_v43 = vpack.c.bf16 %v2442_v39, %v2439_v38  ;;  %v2651_v38 = vld [vmem:[#allocation14 + $0xc0] sm:$0xff]  ;;  %v2652_v39 = vld [vmem:[#allocation14 + $0xc8] sm:$0xff] }
 0x633   : > { %3798 = vmatpush1.bf16.msra.mxu0 %v3797_v45  ;;  %3829 = vmatpush3.bf16.msra.mxu1 %v3828_v46  ;;  %v3823_v45 = vpack.c.bf16 %v2447_v41, %v2444_v40  ;;  %v2446_v46 = vld [vmem:[#allocation11 + $0x2e8] sm:$0xff]  ;;  %v3865_v40 = vpack.c.bf16 %v2634_v37, %v2633_v35  ;;  %v3867_v41 = vpack.c.bf16 %v2652_v39, %v2651_v38  ;;  %v4113_v37 = vld [vmem:[%s4939_s20] sm:$0xff]  ;;  %s4350_s20 = scalar_lea.vmem %s4349_s16, 256 }
 0x634   : > { %3800 = vmatprep.subr.bf16.mxu0 %v3799_v48  ;;  %3830 = vmatprep.subr.bf16.mxu1 %v4488_v0  ;;  %v2448_v48 = vld [vmem:[#allocation11 + $0x2f8] sm:$0xff]  ;;  %v3825_v49 = vpack.c.bf16 %v2446_v46, %v2443_v44  ;;  %v2653_v44 = vld [vmem:[#allocation14 + $0xd0] sm:$0xff]  ;;  %p4352_p12 = scmp.lt.s32.totalorder %s4350_s20, %s4344_s3 }
 0x635   : > { %2529 = vmatprep.mubr.f32.mxu0 %v4489_v1  ;;  %3541 = vmatprep.mubr.msk.f32.mxu1 %vm4490_vm0, %v4489_v1  ;;  %v3849_v53 = vpack.c.bf16 %v2448_v48, %v2445_v47  ;;  %v2637_v48 = vld [vmem:[#allocation14 + $0x50] sm:$0xff] }
 0x636   : > { %p4353_p11 = por %p4352_p12, %p4351_p6 }
 0x637   : > { %3802 = vmatpush1.bf16.msra.mxu0 %v3801_v58  ;;  %3832 = vmatpush3.bf16.msra.mxu1 %v3831_v59  ;;  %v2661_v58 = vld [vmem:[#allocation14 + $0x110] sm:$0xff]  ;;  %v2662_v59 = vld [vmem:[#allocation14 + $0x118] sm:$0xff] }
 0x638   : > { %3804 = vmatprep.subr.bf16.mxu0 %v3803_v61  ;;  %3833 = vmatprep.subr.bf16.mxu1 %v4488_v0  ;;  %v3887_v60 = vpack.c.bf16 %v2662_v59, %v2661_v58  ;;  %v2663_v61 = vld [vmem:[#allocation14 + $0x120] sm:$0xff]  ;;  %v2640_v59 = vld [vmem:[#allocation14 + $0x68] sm:$0xff]  ;;  %p4354_p5 = pnand %p4353_p11, %p4347_p3 }
 0x639   : > { %v3890_v63 = vpack.c.bf16 %v2664_v62, %v2663_v61  ;;  %v2639_v58 = vld [vmem:[#allocation14 + $0x60] sm:$0xff]  ;;  %v2658_v61 = vld [vmem:[#allocation14 + $0xf8] sm:$0xff] }
 0x63a   : > { %v3877_v62 = vpack.c.bf16 %v2640_v59, %v2639_v58 }
 0x63b   : > { %3806 = vmatpush1.bf16.msra.mxu0 %v3805_v5  ;;  %3835 = vmatpush3.bf16.msra.mxu1 %v3834_v6  ;;  %v2667_v5 = vld [vmem:[#allocation14 + $0x140] sm:$0xff]  ;;  %v2668_v6 = vld [vmem:[#allocation14 + $0x148] sm:$0xff] }
 0x63c   : > { %3808 = vmatprep.subr.bf16.mxu0 %v3807_v9  ;;  %3836 = vmatprep.subr.bf16.mxu1 %v4488_v0  ;;  %v3896_v8 = vpack.c.bf16 %v2668_v6, %v2667_v5  ;;  %v2670_v9 = vld [vmem:[#allocation14 + $0x158] sm:$0xff] }
 0x63f   : > { %3810 = vmatpush1.bf16.msra.mxu0 %v3809_v16  ;;  %3838 = vmatpush3.bf16.msra.mxu1 %v3837_v17  ;;  %v2674_v16 = vld [vmem:[#allocation14 + $0x178] sm:$0xff] }
 0x640   : > { %3812 = vmatprep.subr.bf16.mxu0 %v3811_v20  ;;  %3839 = vmatprep.subr.bf16.mxu1 %v4488_v0  ;;  %v3905_v17 = vpack.c.bf16 %v2674_v16, %v2673_v15  ;;  %v2644_v20 = vld [vmem:[#allocation14 + $0x88] sm:$0xff] }
 0x641   : > { %v3851_v21 = vpack.c.bf16 %v2644_v20, %v2643_v18 }
 0x643   : > { %3814 = vmatpush1.bf16.msra.mxu0 %v3813_v25  ;;  %3841 = vmatpush3.bf16.msra.mxu1 %v3840_v27  ;;  %v2646_v25 = vld [vmem:[#allocation14 + $0x98] sm:$0xff] }
 0x644   : > { %3816 = vmatprep.subr.bf16.mxu0 %v3815_v29  ;;  %3842 = vmatprep.subr.bf16.mxu1 %v4488_v0  ;;  %v3855_v27 = vpack.c.bf16 %v2646_v25, %v2645_v24  ;;  %v2630_v29 = vld [vmem:[#allocation14 + $0x18] sm:$0xff] }
 0x645   : > { %v3857_v50 = vpack.c.bf16 %v2630_v29, %v2629_v28 }
 0x647   : > { %3818 = vmatpush1.bf16.msra.mxu0 %v3817_v51  ;;  %3844 = vmatpush3.bf16.msra.mxu1 %v3843_v34  ;;  %v2649_v51 = vld [vmem:[#allocation14 + $0xb0] sm:$0xff]  ;;  %v2650_v34 = vld [vmem:[#allocation14 + $0xb8] sm:$0xff] }
 0x648   : > { %3820 = vmatprep.subr.bf16.mxu0 %v3819_v36  ;;  %3845 = vmatprep.subr.bf16.mxu1 %v4488_v0  ;;  %v3863_v36 = vpack.c.bf16 %v2650_v34, %v2649_v51 }
 0x64b   : > { %3822 = vmatpush1.bf16.msra.mxu0 %v3821_v42  ;;  %3847 = vmatpush3.bf16.msra.mxu1 %v3846_v43  ;;  %v2635_v42 = vld [vmem:[#allocation14 + $0x40] sm:$0xff]  ;;  %v2636_v43 = vld [vmem:[#allocation14 + $0x48] sm:$0xff] }
 0x64c   : > { %3824 = vmatprep.subr.bf16.mxu0 %v3823_v45  ;;  %3848 = vmatprep.subr.bf16.mxu1 %v4488_v0  ;;  %v2654_v45 = vld [vmem:[#allocation14 + $0xd8] sm:$0xff]  ;;  %v3869_v46 = vpack.c.bf16 %v2636_v43, %v2635_v42 }
 0x64d   : > { %v3871_v47 = vpack.c.bf16 %v2654_v45, %v2653_v44 }
 0x64f   : > { %3826 = vmatpush1.bf16.msra.mxu0 %v3825_v49  ;;  %3850 = vmatpush3.bf16.msra.mxu1 %v3849_v53  ;;  %v2638_v49 = vld [vmem:[#allocation14 + $0x58] sm:$0xff]  ;;  %v2655_v53 = vld [vmem:[#allocation14 + $0xe0] sm:$0xff] }
 0x650   : > { %3883 = vmatprep.subr.bf16.mxu1 %v4488_v0  ;;  %3852 = vmatprep.subr.bf16.mxu0 %v3851_v21  ;;  %v3873_v57 = vpack.c.bf16 %v2638_v49, %v2637_v48 }
 0x652   : > { %2530 = vmatmul.mubr.f32.vlgmr.msra.gmra.mrb[4].mxu0 %v5000_v26  ;;  %3542 = vmatmul.mubr.f32.vlgmr.msra.gmra.mrb[22].mxu1 %v5000_v26 }
 0x653   : > { %3885 = vmatpush3.bf16.msra.mxu1 %v3884_v30  ;;  %3576 = vmatprep.mubr.msk.f32.mxu1 %vm4490_vm0, %v4489_v1  ;;  %v2669_v1 = vld [vmem:[#allocation14 + $0x150] sm:$0xff]  ;;  %v3875_v30 = vpack.c.bf16 %v2656_v54, %v2655_v53 }
 0x654   : > { %3886 = vmatprep.subr.bf16.mxu1 %v4488_v0  ;;  %v3899_v11 = vpack.c.bf16 %v2670_v9, %v2669_v1  ;;  %3854 = vmatpush3.bf16.msra.mxu0 %v3853_v23  ;;  %v3126_v1 = vld [vmem:[%s5381_s23 + $0x2] ss:$4 sm:$0x7] }
 0x655   : > { %3856 = vmatprep.subr.bf16.mxu0 %v3855_v27  ;;  %v2225_v9 = vrot.slane %v3126_v1, %v4979_v52  ;;  %v2229_v12 = vrot.slane %v3126_v1, %v4988_v55 }
 0x657   : > { %3888 = vmatpush3.bf16.msra.mxu1 %v3887_v60  ;;  %v2657_v60 = vld [vmem:[#allocation14 + $0xf0] sm:$0xff] }
 0x658   : > { %3889 = vmatprep.subr.bf16.mxu1 %v4488_v0  ;;  %3858 = vmatpush3.bf16.msra.mxu0 %v3857_v50 }
 0x65b   : > { %3891 = vmatpush3.bf16.msra.mxu1 %v3890_v63  ;;  %v3879_v63 = vpack.c.bf16 %v2658_v61, %v2657_v60 }
 0x65c   : > { %3892 = vmatprep.subr.bf16.mxu1 %v4488_v0 }
 0x65f   : > { %3894 = vmatpush3.bf16.msra.mxu1 %v3893_v4  ;;  %v3881_v4 = vpack.c.bf16 %v2642_v3, %v2641_v2 }
 0x660   : > { %3895 = vmatprep.subr.bf16.mxu1 %v4488_v0 }
 0x663   : > { %3897 = vmatpush3.bf16.msra.mxu1 %v3896_v8  ;;  %v3127_v8 = vld [vmem:[%s5381_s23 + $0x3] ss:$4 sm:$0x7] }
 0x664   : > { %3898 = vmatprep.subr.bf16.mxu1 %v4488_v0  ;;  %v2457_v13 = vrot.slane %v3127_v8, %v4988_v55  ;;  %v2461_v27 = vrot.slane %v3127_v8, %v4995_v10  ;;  %v2233_v55 = vrot.slane %v3126_v1, %v4995_v10 }
 0x667   : > { %3900 = vmatpush3.bf16.msra.mxu1 %v3899_v11  ;;  %v2453_v11 = vrot.slane %v3127_v8, %v4979_v52 }
 0x668   : > { %3901 = vmatprep.subr.bf16.mxu1 %v4488_v0 }
 0x66b   : > { %3903 = vmatpush3.bf16.msra.mxu1 %v3902_v14  ;;  %v3911_v14 = vadd.f32 %v2453_v11, %v2225_v9 }
 0x66c   : > { %3904 = vmatprep.subr.bf16.mxu1 %v4488_v0  ;;  %v2647_v0 = vld [vmem:[#allocation14 + $0xa0] sm:$0xff] }
 0x66d   : > { %v3859_v32 = vpack.c.bf16 %v2648_v31, %v2647_v0 }
 0x66f   : > { %3906 = vmatpush3.bf16.msra.mxu1 %v3905_v17  ;;  %3860 = vmatprep.subr.bf16.mxu0 %v3859_v32  ;;  %v3913_v17 = vadd.f32 %v2457_v13, %v2229_v12 }
 0x672   : > { %3577 = vmatmul.mubr.f32.vlgmr.msra.gmra.mrb[24].mxu1 %v5152_v56  ;;  %v2631_v56 = vld [vmem:[#allocation14 + $0x20] sm:$0xff] }
 0x673   : > { %v3861_v19 = vpack.c.bf16 %v2632_v33, %v2631_v56 }
 0x675   : > { %3862 = vmatpush3.bf16.msra.mxu0 %v3861_v19 }
 0x676   : > { %3864 = vmatprep.subr.bf16.mxu0 %v3863_v36 }
 0x679   : > { %3866 = vmatpush3.bf16.msra.mxu0 %v3865_v40 }
 0x67a   : > { %3868 = vmatprep.subr.bf16.mxu0 %v3867_v41 }
 0x67d   : > { %3870 = vmatpush3.bf16.msra.mxu0 %v3869_v46 }
 0x67e   : > { %3872 = vmatprep.subr.bf16.mxu0 %v3871_v47 }
 0x681   : > { %3874 = vmatpush3.bf16.msra.mxu0 %v3873_v57 }
 0x682   : > { %3876 = vmatprep.subr.bf16.mxu0 %v3875_v30 }
 0x685   : > { %3878 = vmatpush3.bf16.msra.mxu0 %v3877_v62 }
 0x686   : > { %3880 = vmatprep.subr.bf16.mxu0 %v3879_v63 }
 0x689   : > { %3882 = vmatpush3.bf16.msra.mxu0 %v3881_v4 }
 0x705   : > { %v2397_v5 = vpop.f32.mrb[20].mxu1 }
 0x706   : > { %v3508_v6 = vpop.f32.mrb[21].mxu1  ;;  %v2398_v0 = vadd.f32 %v2397_v5, %v2233_v55 }
 0x725   : > { %v2531_v15 = vpop.f32.mrb[4].mxu0  ;;  %v2602_v16 = vpop.f32.mrb[22].mxu1 }
 0x726   : > { %v3912_v18 = vadd.f32 %v3911_v14, %v2531_v15  ;;  %v2533_v20 = vpop.f32.mrb[5].mxu0  ;;  %v3543_v21 = vpop.f32.mrb[23].mxu1  ;;  %v2603_v29 = vadd.f32 %v2602_v16, %v2461_v27 }
 0x727   : > { %v3914_v7 = vadd.f32 %v3913_v17, %v2533_v20 }
 0x728   : > { %v3139_v22 = vmul.f32 -1.442695, %v3912_v18 }
 0x729   : > { %v3140_v23 = vmul.f32 -1.442695, %v3914_v7 }
 0x72a   : > { %4101 = vpow2.f32 %v3139_v22 }
 0x72b   : > { %4103 = vpow2.f32 %v3140_v23 }
 0x734   : > { %v4102_v24 = vpop.eup %4101 }
 0x735   : > { %v2611_v25 = vadd.f32 1.0, %v4102_v24  ;;  %v4104_v52 = vpop.eup %4103 }
 0x736   : > { %v2617_v28 = vadd.f32 1.0, %v4104_v52 }
 0x737   : > { %4105 = vrcp.f32 %v2611_v25 }
 0x738   : > { %4107 = vrcp.f32 %v2617_v28 }
 0x741   : > { %v4106_v50 = vpop.eup %4105 }
 0x742   : > { %v2620_v31 = vmul.f32 %v4106_v50, %v2603_v29  ;;  %v4108_v19 = vpop.eup %4107 }
 0x743   : > { %v2623_v51 = vsub.f32 1.0, %v4108_v19  ;;  %v2625_v35 = vmul.f32 %v4108_v19, %v5000_v26 }
 0x744   : > { %v2621_v32 = vadd.f32 %v2620_v31, %v2398_v0 }
 0x745   : > { %v2818_v56 = vpop.f32.mrb[24].mxu1 }
 0x746   : > { %4109 = vtanh.f32 %v2621_v32  ;;  %v3578_v33 = vpop.f32.mrb[25].mxu1 }
 0x750   : > { %v4110_v34 = vpop.eup %4109 }
 0x751   : > { %v2624_v10 = vmul.f32 %v4110_v34, %v2623_v51 }
 0x753   : > { %v2626_v36 = vadd.f32 %v2625_v35, %v2624_v10 }
 0x755   : > { %2746 = vmatprep.mubr.f32.mxu0 %v2626_v36  ;;  %2825 = vst [vmem:[%s666_s26] sm:$0xff] %v2626_v36 }
 0x756   : > { %2747 = vmatmul.mubr.f32.vlgmr.msra.gmra.mrb[6].mxu0 %v4113_v37 }
 0x757   : > { %4357 = shalt.err (!%p4354_p5)
}
 0x758   : > { %s4358_s22 = scalar_lea.hbm %s5200_s19, 128  ;;  %s4362_s15 = scalar_lea.hbm %s5385_s8, 256 }
 0x759   : > { %p4359_p4 = scmp.ne.s32.totalorder %s5200_s19, %s4358_s22  ;;  %p4363_p2 = scmp.lt.u32.totalorder %s5200_s19, %s5385_s8 }
 0x75a   : > { %p4364_p7 = scmp.lt.u32.totalorder %s4362_s15, %s4358_s22  ;;  %p4366_p1 = scmp.lt.u32.totalorder %s4358_s22, %s5200_s19 }
 0x75b   : > { %p4360_p0 = pnand %p4359_p4, %p5386_p13 }
 0x75c   : > { %p4365_p9 = por %p4364_p7, %p4363_p2 }
 0x75d   : > { %p4361_p8 = pneg %p4360_p0 }
 0x75e   : > { %p4367_p10 = por %p4366_p1, %p4365_p9 }
 0x760   : > { %p4368_p3 = pnand %p4367_p10, %p4361_p8 }
 0x762   : > { %4371 = shalt.err (!%p4368_p3)
}
 0x763   : > { %3946 = dma.vmem_to_hbm [thread:$0]  (%p5386_p13), %s2861_s5, 128, %s5200_s19, %s2832_s18   ;;  %v3141_v38 = vld [vmem:[#allocation15] ss:$0 sm:$0xff] }
 0x764   : > { %s659_s7 = scalar_lea.vmem [#allocation17], %s4889_s9  ;;  %s5387_s12 = sld [smem:[#allocation45_spill]] }
 0x765   : > { %s2847_s13 = sshll.u32 %s659_s7, 4  ;;  %s2827_s19 = scalar_lea.sflag [#allocation5], %s4886_s28  ;;  %s5228_s13 = int_to_ptr.vmem [resolvable:$true] %s2847_s13 }
 0x766   : > { %s4372_s5 = scalar_lea.vmem %s5228_s13, 128  ;;  %s4493_s9 = smov [#allocation17]  }
 0x767   : > { %p4373_p6 = scmp.ne.s32.totalorder %s5228_s13, %s4372_s5  ;;  %s4376_s21 = sshll.u32 %s4493_s9, 4  ;;  %s4377_s21 = int_to_ptr.vmem [resolvable:$false] %s4376_s21 }
 0x768   : > { %s4378_s18 = scalar_lea.vmem %s4377_s21, 256  ;;  %p4379_p5 = scmp.lt.s32.totalorder %s5228_s13, %s4377_s21 }
 0x769   : > { %p4374_p12 = pnand %p4373_p6, %p5386_p13  ;;  %p4380_p4 = scmp.lt.s32.totalorder %s4378_s18, %s4372_s5 }
 0x76a   : > { %s5226_s3 = scalar_lea.hbm %s5387_s12, %s3144_s14 }
 0x76b   : > { %p4375_p11 = pneg %p4374_p12  ;;  %p4381_p0 = por %p4380_p4, %p4379_p5 }
 0x76d   : > { %p4382_p8 = pnand %p4381_p0, %p4375_p11 }
 0x829   : > { %v3293_v26 = vpop.f32.mrb[6].mxu0 }
 0x82a   : > { %v3294_v39 = vpop.f32.mrb[7].mxu0 }
 0x82b   : > { %v3295_v40 = vadd.f32 %v3294_v39, %v3293_v26 }
 0x82d   : > { %v2749_v41 = vadd.f32 %v3295_v40, %v3141_v38 }
 0x82f   : > { %v2819_v42 = vadd.f32 %v2818_v56, %v2749_v41 }
 0x831   : > { %4111 = vtanh.f32 %v2819_v42 }
 0x83b   : > { %v4112_v43 = vpop.eup %4111 }
 0x83c   : > { %2823 = vst [vmem:[%s659_s7] sm:$0xff] %v4112_v43 }
 0x83d   : > { %4385 = shalt.err (!%p4382_p8)
}
 0x83e   : > { %s4386_s28 = scalar_lea.hbm %s5226_s3, 128  ;;  %s4390_s16 = scalar_lea.hbm %s5387_s12, 256 }
 0x83f   : > { %p4387_p2 = scmp.ne.s32.totalorder %s5226_s3, %s4386_s28  ;;  %p4391_p1 = scmp.lt.u32.totalorder %s5226_s3, %s5387_s12 }
 0x840   : > { %p4392_p10 = scmp.lt.u32.totalorder %s4390_s16, %s4386_s28  ;;  %p4394_p6 = scmp.lt.u32.totalorder %s4386_s28, %s5226_s3 }
 0x841   : > { %p4388_p7 = pnand %p4387_p2, %p5386_p13 }
 0x842   : > { %p4393_p3 = por %p4392_p10, %p4391_p1 }
 0x843   : > { %p4389_p9 = pneg %p4388_p7 }
 0x844   : > { %p4395_p12 = por %p4394_p6, %p4393_p3 }
 0x846   : > { %p4396_p11 = pnand %p4395_p12, %p4389_p9 }
 0x848   : > { %4399 = shalt.err (!%p4396_p11)
}
 0x849   : > { %3945 = dma.vmem_to_hbm [thread:$0]  (%p5386_p13), %s5228_s13, 128, %s5226_s3, %s2827_s19  }
 0x84a PF: > { %s5388_s17 = sld [smem:[#allocation27_spill]]  ;;  %s5389_s30 = sld [smem:[#allocation37_spill]] }
 0x84b   : > { %s5390_s15 = sld [smem:[#allocation31_spill]] }
 0x850   : > { %s2872_s24 = sand.u32 1, %s5388_s17   ;;  %p5391_p5 = scmp.ne.s32.totalorder %s5389_s30, 0 }
 0x851   : > { %p5392_p4 = scmp.ge.s32.totalorder %s5390_s15, 2  ;;  %s2873_s2 = scalar_lea.sflag [#allocation5], %s2872_s24 }
 0x853   : > { %p3976_p0 = pnand %p5392_p4, %p5391_p5 }
 0x855   : > { %4445 = dma.done.wait (!%p3976_p0), %s2873_s2, 128  }
 0x856   : > { %4447 = vsyncadd (!%p3976_p0), %s2873_s2, 4294967168  ;;  %s2882_s7 = scalar_lea.sflag [#allocation19], %s2872_s24 }
 0x857   : > { %4449 = dma.done.wait (!%p3976_p0), %s2882_s7, 128  }
 0x858   : > { %4451 = vsyncadd (!%p3976_p0), %s2882_s7, 4294967168  ;;  %s39_s30 = sadd.s32 1, %s5390_s15   ;;  %s5393_s25 = sld [smem:[#allocation28_spill]] }
 0x859   : > { %p36_p8 = scmp.ge.s32.totalorder %s39_s30, 4   ;;  %s5394_s26 = sld [smem:[#allocation29_spill]] }
 0x85a   : > { %s5395_s27 = sld [smem:[#allocation36_spill]]  ;;  %s5396_s13 = sld [smem:[#allocation33_spill]] }
 0x85b   : > { %s5397_s28 = smov %s4470_s29  ;;  %38 = sbr.rel (!%p36_p8) target bundleno = 23 (0x17), region = 187 }
 0x860   : > { %s5398_s29 = smov %s5396_s13 }
 0x862   :  { %2887 = vsyncpa [#allocation4], 1 }
 0x863   :  { %2889 = vsyncpa [#allocation4 + $0x1], 1 }
 0x864   :  { %2890 = vsyncpa [#allocation7], 1 }
 0x865   :  { %2892 = vsyncpa [#allocation7 + $0x1], 1 }
 0x866   :  { %2893 = vsyncpa [#allocation10], 1 }
 0x867   :  { %2894 = vsyncpa [#allocation13], 1 }
 0x868   :  { %2895 = vsyncpa [#allocation16], 1 }
 0x869   :  { %2896 = vsyncpa [#allocation5], 1 }
 0x86a   :  { %2898 = vsyncpa [#allocation5 + $0x1], 1 }
 0x86b   :  { %2899 = vsyncpa [#allocation19], 1 }
 0x86c   :  { %2901 = vsyncpa [#allocation19 + $0x1], 1 }

</bundles_post_ra>
